<compile_context>
chip_gen: v7x
topology: tpu7x:2x2x1
jax: 0.10.0
libtpu: 0.0.40
codegen_flags: <defaults>
</compile_context>

<pallas_src>
import jax
import jax.numpy as jnp
from jax.experimental import pallas as pl
from jax.experimental.pallas import tpu as pltpu

NUM_CLASSES = 5
BLOCK_EXPANSION = 4              # resnet101 Bottleneck expansion
FEAT = 512 * BLOCK_EXPANSION     # 2048
HIDDEN = 512
BN_EPS = 1e-5
NC_PAD = 128                     # lane-dense padded class dim

_MAX_SPATIAL_TILE = 2048         # bounds in-kernel unroll of 128-wide chunk adds
_X_BLOCK_BUDGET = 4 * 1024 * 1024  # bytes for the double-buffered x block


def _round_up(x, m):
    return ((x + m - 1) // m) * m


def _choose_spatial_tile(s_pad, tb, c):
    """Largest multiple-of-128 divisor of s_pad whose double-buffered bf16
    block fits the budget (and stays under the unroll cap)."""
    best = 128
    for ts in range(128, min(s_pad, _MAX_SPATIAL_TILE) + 1, 128):
        if s_pad % ts == 0 and 2 * tb * c * ts * 2 <= _X_BLOCK_BUDGET:
            best = ts
    return best


def eyenet_kernel(x_ref, wproj_ref, w1_ref, b1_ref, w2_ref, b2_ref,
                  out_ref, acc_ref):
    s = pl.program_id(1)

    @pl.when(s == 0)
    def _init():
        acc_ref[...] = jnp.zeros_like(acc_ref)

    # ---- GAP partial sums: 128-wide lane chunks added on the VPU ----
    tb, c, ts = x_ref.shape
    xt = x_ref[...].astype(jnp.float32)            # (TB, C, TS)
    part = xt[:, :, 0:128]
    for k in range(1, ts // 128):                  # static unroll (ts <= 2048)
        part = part + xt[:, :, k * 128:(k + 1) * 128]
    acc_ref[...] += part                           # (TB, C, 128) f32 scratch

    # ---- head: single lane reduce + 3 matmuls, only on the last chunk ----
    @pl.when(s == pl.num_programs(1) - 1)
    def _finalize():
        pooled = jnp.sum(acc_ref[...], axis=-1)    # (TB, C) single 128-wide reduce
        # backbone-stub projection (1/S and bn1 scale already folded into wproj)
        feat = jnp.dot(pooled, wproj_ref[...],
                       preferred_element_type=jnp.float32)          # (TB, FEAT)
        # linear1 (bn1 shift folded into b1_eff) + relu
        h = jnp.dot(feat.astype(jnp.bfloat16), w1_ref[...],
                    preferred_element_type=jnp.float32) + b1_ref[...]
        h = jnp.maximum(h, 0.0)
        # linear2 (bn2 scale/shift folded into w2_eff / b2_eff)
        logits = jnp.dot(h.astype(jnp.bfloat16), w2_ref[...],
                         preferred_element_type=jnp.float32) + b2_ref[...]
        out_ref[...] = logits.astype(out_ref.dtype)                 # (TB, 128)


def _bn_scale_shift(gamma, beta, mean, var):
    scale = gamma / jnp.sqrt(var + BN_EPS)
    shift = beta - mean * scale
    return scale, shift


def eyenet_forward(x, params):
    B, C, H, W = x.shape
    S = H * W
    S_pad = _round_up(S, 128)

    # ---- wrapper-side constant folding (zero per-call cost) ----
    s1, t1 = _bn_scale_shift(params["bn1_gamma"], params["bn1_beta"],
                             params["bn1_mean"], params["bn1_var"])
    s2, t2 = _bn_scale_shift(params["bn2_gamma"], params["bn2_beta"],
                             params["bn2_mean"], params["bn2_var"])

    # fold 1/S (GAP mean) and bn1 scale into the projection (tiny: keep f32)
    w_proj_eff = (params["w_proj"] * s1[None, :] / float(S)).astype(jnp.float32)
    # linear1 with bn1 shift folded into its bias
    w1t = params["w1"].T.astype(jnp.bfloat16)                         # (FEAT, 512)
    b1_eff = (params["b1"] + t1 @ params["w1"].T)[None, :].astype(jnp.float32)
    # linear2 with bn2 scale/shift folded in, class dim padded to 128
    w2t_eff = s2[:, None] * params["w2"].T                            # (512, NC)
    b2_eff = params["b2"] + t2 @ params["w2"].T                       # (NC,)
    w2t_pad = jnp.pad(w2t_eff, ((0, 0), (0, NC_PAD - NUM_CLASSES))
                      ).astype(jnp.bfloat16)                          # (512, 128)
    b2_pad = jnp.pad(b2_eff[None, :], ((0, 0), (0, NC_PAD - NUM_CLASSES))
                     ).astype(jnp.float32)                            # (1, 128)

    # ---- batch / spatial tiling ----
    TB = min(128, _round_up(B, 8))           # sublane-aligned batch tile
    B_pad = _round_up(B, TB)
    TS = _choose_spatial_tile(S_pad, TB, C)

    x_flat = x.reshape(B, C, S).astype(jnp.bfloat16)
    x_pad = jnp.pad(x_flat, ((0, B_pad - B), (0, 0), (0, S_pad - S)))

    grid = (B_pad // TB, S_pad // TS)        # (batch: parallel, spatial: reduce)

    flops = (2 * B_pad * (C * FEAT + FEAT * HIDDEN + HIDDEN * NC_PAD)
             + B_pad * C * S_pad)
    bytes_accessed = (x_pad.size * 2 + w_proj_eff.size * 4 + w1t.size * 2
                      + b1_eff.size * 4 + w2t_pad.size * 2 + b2_pad.size * 4
                      + B_pad * NC_PAD * 4)

    out = pl.pallas_call(
        eyenet_kernel,
        out_shape=jax.ShapeDtypeStruct((B_pad, NC_PAD), jnp.float32),
        grid_spec=pltpu.PrefetchScalarGridSpec(
            num_scalar_prefetch=0,
            grid=grid,
            in_specs=[
                pl.BlockSpec((TB, C, TS), lambda b, s: (b, 0, s)),   # x (pipelined)
                pl.BlockSpec((C, FEAT), lambda b, s: (0, 0)),        # resident weights
                pl.BlockSpec((FEAT, HIDDEN), lambda b, s: (0, 0)),
                pl.BlockSpec((1, HIDDEN), lambda b, s: (0, 0)),
                pl.BlockSpec((HIDDEN, NC_PAD), lambda b, s: (0, 0)),
                pl.BlockSpec((1, NC_PAD), lambda b, s: (0, 0)),
            ],
            out_specs=pl.BlockSpec((TB, NC_PAD), lambda b, s: (b, 0)),
            scratch_shapes=[pltpu.VMEM((TB, C, 128), jnp.float32)],
        ),
        compiler_params=pltpu.CompilerParams(
            dimension_semantics=("parallel", "arbitrary"),
            vmem_limit_bytes=32 * 1024 * 1024,   # fits all generations incl. v7x
        ),
        cost_estimate=pl.CostEstimate(flops=int(flops), transcendentals=0,
                                      bytes_accessed=int(bytes_accessed)),
    )(x_pad, w_proj_eff, w1t, b1_eff, w2t_pad, b2_pad)

    return out[:B, :NUM_CLASSES]


def eyenet_reference(x, params):
    """Pure-JAX f32 reference with the original (unfolded) forward semantics."""
    B, C, H, W = x.shape
    pooled = jnp.mean(x.reshape(B, C, H * W).astype(jnp.float32), axis=-1)
    feat = pooled @ params["w_proj"]
    s1, t1 = _bn_scale_shift(params["bn1_gamma"], params["bn1_beta"],
                             params["bn1_mean"], params["bn1_var"])
    s2, t2 = _bn_scale_shift(params["bn2_gamma"], params["bn2_beta"],
                             params["bn2_mean"], params["bn2_var"])
    h = feat * s1[None, :] + t1[None, :]
    h = h @ params["w1"].T + params["b1"]
    h = jnp.maximum(h, 0.0)
    h = h * s2[None, :] + t2[None, :]
    return h @ params["w2"].T + params["b2"]


def init_params(key, in_channels):
    ks = jax.random.split(key, 12)
    n = jax.random.normal
    return {
        # backbone-stub projection (C -> FEAT)
        "w_proj":   0.05 * n(ks[0], (in_channels, FEAT), jnp.float32),
        # bn1 (BatchNorm1d over FEAT)
        "bn1_gamma": 1.0 + 0.1 * n(ks[1], (FEAT,), jnp.float32),
        "bn1_beta":  0.1 * n(ks[2], (FEAT,), jnp.float32),
        "bn1_mean":  0.05 * n(ks[3], (FEAT,), jnp.float32),
        "bn1_var":   1.0 + 0.1 * jnp.abs(n(ks[4], (FEAT,), jnp.float32)),
        # linear1: PyTorch layout (out=512, in=FEAT)
        "w1": 0.02 * n(ks[5], (HIDDEN, FEAT), jnp.float32),
        "b1": 0.02 * n(ks[6], (HIDDEN,), jnp.float32),
        # bn2 (BatchNorm1d over 512)
        "bn2_gamma": 1.0 + 0.1 * n(ks[7], (HIDDEN,), jnp.float32),
        "bn2_beta":  0.1 * n(ks[8], (HIDDEN,), jnp.float32),
        "bn2_mean":  0.05 * n(ks[9], (HIDDEN,), jnp.float32),
        "bn2_var":   1.0 + 0.1 * jnp.abs(n(ks[10], (HIDDEN,), jnp.float32)),
        # linear2: PyTorch layout (out=num_classes, in=512)
        "w2": 0.05 * n(ks[11], (NUM_CLASSES, HIDDEN), jnp.float32),
        "b2": jnp.linspace(-0.1, 0.1, NUM_CLASSES, dtype=jnp.float32),
    }


if __name__ == "__main__":
    key = jax.random.PRNGKey(0)
    k_x, k_p = jax.random.split(key)

    B, C, H, W = 2, 4, 16, 16
    x = jax.random.normal(k_x, (B, C, H, W), dtype=jnp.float32)
    params = init_params(k_p, C)

    out = jax.block_until_ready(eyenet_forward(x, params))
    ref = eyenet_reference(x, params)

    assert out.shape == (B, NUM_CLASSES), out.shape
    # bf16 inputs/weights -> slightly looser tolerance than pure f32
    assert jnp.allclose(out, ref, atol=1e-2, rtol=1e-2), (out, ref)

    print("KERNEL_OK")
</pallas_src>

<mosaic_0001>
module attributes {stable_mosaic.version = 11 : i64} {
  func.func @eyenet_kernel(%arg0: i32, %arg1: i32, %arg2: memref<8x4x256xbf16, #tpu.memory_space<vmem>>, %arg3: memref<4x2048xf32, #tpu.memory_space<vmem>>, %arg4: memref<2048x512xbf16, #tpu.memory_space<vmem>>, %arg5: memref<1x512xf32, #tpu.memory_space<vmem>>, %arg6: memref<512x128xbf16, #tpu.memory_space<vmem>>, %arg7: memref<1x128xf32, #tpu.memory_space<vmem>>, %arg8: memref<8x128xf32, #tpu.memory_space<vmem>>, %arg9: memref<8x4x128xf32, #tpu.memory_space<vmem>>) attributes {dimension_semantics = [#tpu.dimension_semantics<parallel>, #tpu.dimension_semantics<arbitrary>], iteration_bounds = array<i64: 1, 1>, scalar_prefetch = 0 : i64, scratch_operands = 1 : i64, tpu.core_type = #tpu.core_type<tc>, window_params = [{transform_indices = @transform_0, window_bounds = array<i64: 8, 4, 256>}, {pipeline_mode = #tpu.pipeline_mode<synchronous>, transform_indices = @transform_1, window_bounds = array<i64: 4, 2048>}, {pipeline_mode = #tpu.pipeline_mode<synchronous>, transform_indices = @transform_2, window_bounds = array<i64: 2048, 512>}, {pipeline_mode = #tpu.pipeline_mode<synchronous>, transform_indices = @transform_3, window_bounds = array<i64: 1, 512>}, {pipeline_mode = #tpu.pipeline_mode<synchronous>, transform_indices = @transform_4, window_bounds = array<i64: 512, 128>}, {pipeline_mode = #tpu.pipeline_mode<synchronous>, transform_indices = @transform_5, window_bounds = array<i64: 1, 128>}, {transform_indices = @transform_6, window_bounds = array<i64: 8, 128>}]} {
    %c0_i32 = arith.constant 0 : i32
    %0 = arith.cmpi eq, %arg1, %c0_i32 : i32
    %1 = arith.extui %0 : i1 to i32
    %c0_i32_0 = arith.constant 0 : i32
    %2 = arith.cmpi ne, %1, %c0_i32_0 : i32
    scf.if %2 {
      %cst = arith.constant 0.000000e+00 : f32
      %14 = vector.broadcast %cst : f32 to vector<8x4x128xf32>
      %c0_11 = arith.constant 0 : index
      %c0_12 = arith.constant 0 : index
      %c0_13 = arith.constant 0 : index
      %15 = vector.load %arg9[%c0_11, %c0_12, %c0_13] : memref<8x4x128xf32, #tpu.memory_space<vmem>>, vector<8x4x128xf32>
      tpu.vector_store %arg9[%c0_11, %c0_12, %c0_13], %14 {strides = array<i32>} : memref<8x4x128xf32, #tpu.memory_space<vmem>>, vector<8x4x128xf32>,
    } else {
    }
    %c0 = arith.constant 0 : index
    %c0_1 = arith.constant 0 : index
    %c0_2 = arith.constant 0 : index
    %3 = vector.load %arg2[%c0, %c0_1, %c0_2] : memref<8x4x256xbf16, #tpu.memory_space<vmem>>, vector<8x4x256xbf16>
    %4 = arith.extf %3 : vector<8x4x256xbf16> to vector<8x4x256xf32>
    %5 = vector.extract_strided_slice %4 {offsets = [0, 0, 0], sizes = [8, 4, 128], strides = [1, 1, 1]} : vector<8x4x256xf32> to vector<8x4x128xf32>
    %6 = vector.extract_strided_slice %4 {offsets = [0, 0, 128], sizes = [8, 4, 128], strides = [1, 1, 1]} : vector<8x4x256xf32> to vector<8x4x128xf32>
    %7 = arith.addf %5, %6 : vector<8x4x128xf32>
    %c0_3 = arith.constant 0 : index
    %c0_4 = arith.constant 0 : index
    %c0_5 = arith.constant 0 : index
    %8 = vector.load %arg9[%c0_3, %c0_4, %c0_5] : memref<8x4x128xf32, #tpu.memory_space<vmem>>, vector<8x4x128xf32>
    %9 = arith.addf %8, %7 : vector<8x4x128xf32>
    %c0_6 = arith.constant 0 : index
    %c0_7 = arith.constant 0 : index
    %c0_8 = arith.constant 0 : index
    %10 = vector.load %arg9[%c0_6, %c0_7, %c0_8] : memref<8x4x128xf32, #tpu.memory_space<vmem>>, vector<8x4x128xf32>
    tpu.vector_store %arg9[%c0_6, %c0_7, %c0_8], %9 {strides = array<i32>} : memref<8x4x128xf32, #tpu.memory_space<vmem>>, vector<8x4x128xf32>,
    %c0_i32_9 = arith.constant 0 : i32
    %11 = arith.cmpi eq, %arg1, %c0_i32_9 : i32
    %12 = arith.extui %11 : i1 to i32
    %c0_i32_10 = arith.constant 0 : i32
    %13 = arith.cmpi ne, %12, %c0_i32_10 : i32
    scf.if %13 {
      %c0_11 = arith.constant 0 : index
      %c0_12 = arith.constant 0 : index
      %c0_13 = arith.constant 0 : index
      %14 = vector.load %arg9[%c0_11, %c0_12, %c0_13] : memref<8x4x128xf32, #tpu.memory_space<vmem>>, vector<8x4x128xf32>
      %cst = arith.constant dense<0.000000e+00> : vector<8x4xf32>
      %15 = vector.multi_reduction <add>, %14, %cst [2] : vector<8x4x128xf32> to vector<8x4xf32>
      %c0_14 = arith.constant 0 : index
      %c0_15 = arith.constant 0 : index
      %16 = vector.load %arg3[%c0_14, %c0_15] : memref<4x2048xf32, #tpu.memory_space<vmem>>, vector<4x2048xf32>
      %cst_16 = arith.constant dense<0.000000e+00> : vector<8x2048xf32>
      %17 = tpu.matmul %15, %16, %cst_16 {dimension_numbers = #tpu.dot_dimension_numbers<[1], [0], [0], [1], [0, 0, 1, 1], [], []>} : vector<8x4xf32>, vector<4x2048xf32>, vector<8x2048xf32> -> vector<8x2048xf32>
      %18 = arith.truncf %17 : vector<8x2048xf32> to vector<8x2048xbf16>
      %c0_17 = arith.constant 0 : index
      %c0_18 = arith.constant 0 : index
      %19 = vector.load %arg4[%c0_17, %c0_18] : memref<2048x512xbf16, #tpu.memory_space<vmem>>, vector<2048x512xbf16>
      %cst_19 = arith.constant dense<0.000000e+00> : vector<8x512xf32>
      %20 = tpu.matmul %18, %19, %cst_19 {dimension_numbers = #tpu.dot_dimension_numbers<[1], [0], [0], [1], [0, 0, 1, 1], [], []>} : vector<8x2048xbf16>, vector<2048x512xbf16>, vector<8x512xf32> -> vector<8x512xf32>
      %c0_20 = arith.constant 0 : index
      %c0_21 = arith.constant 0 : index
      %21 = vector.load %arg5[%c0_20, %c0_21] : memref<1x512xf32, #tpu.memory_space<vmem>>, vector<1x512xf32>
      %22 = vector.broadcast %21 : vector<1x512xf32> to vector<8x512xf32>
      %23 = arith.addf %20, %22 : vector<8x512xf32>
      %cst_22 = arith.constant 0.000000e+00 : f32
      %24 = vector.broadcast %cst_22 : f32 to vector<8x512xf32>
      %25 = arith.maximumf %23, %24 : vector<8x512xf32>
      %26 = arith.truncf %25 : vector<8x512xf32> to vector<8x512xbf16>
      %c0_23 = arith.constant 0 : index
      %c0_24 = arith.constant 0 : index
      %27 = vector.load %arg6[%c0_23, %c0_24] : memref<512x128xbf16, #tpu.memory_space<vmem>>, vector<512x128xbf16>
      %cst_25 = arith.constant dense<0.000000e+00> : vector<8x128xf32>
      %28 = tpu.matmul %26, %27, %cst_25 {dimension_numbers = #tpu.dot_dimension_numbers<[1], [0], [0], [1], [0, 0, 1, 1], [], []>} : vector<8x512xbf16>, vector<512x128xbf16>, vector<8x128xf32> -> vector<8x128xf32>
      %c0_26 = arith.constant 0 : index
      %c0_27 = arith.constant 0 : index
      %29 = vector.load %arg7[%c0_26, %c0_27] : memref<1x128xf32, #tpu.memory_space<vmem>>, vector<1x128xf32>
      %30 = vector.broadcast %29 : vector<1x128xf32> to vector<8x128xf32>
      %31 = arith.addf %28, %30 : vector<8x128xf32>
      %c0_28 = arith.constant 0 : index
      %c0_29 = arith.constant 0 : index
      %32 = vector.load %arg8[%c0_28, %c0_29] : memref<8x128xf32, #tpu.memory_space<vmem>>, vector<8x128xf32>
      tpu.vector_store %arg8[%c0_28, %c0_29], %31 {strides = array<i32>} : memref<8x128xf32, #tpu.memory_space<vmem>>, vector<8x128xf32>,
    } else {
    }
    return
  }
  func.func @transform_0(%arg0: i32, %arg1: i32) -> (i32, i32, i32) {
    %c0_i32 = arith.constant 0 : i32
    %c0_i32_0 = arith.constant 0 : i32
    return %arg0, %c0_i32, %arg1 : i32, i32, i32
  }
  func.func @transform_1(%arg0: i32, %arg1: i32) -> (i32, i32) {
    %c0_i32 = arith.constant 0 : i32
    %c0_i32_0 = arith.constant 0 : i32
    %c0_i32_1 = arith.constant 0 : i32
    return %c0_i32, %c0_i32_0 : i32, i32
  }
  func.func @transform_2(%arg0: i32, %arg1: i32) -> (i32, i32) {
    %c0_i32 = arith.constant 0 : i32
    %c0_i32_0 = arith.constant 0 : i32
    %c0_i32_1 = arith.constant 0 : i32
    return %c0_i32, %c0_i32_0 : i32, i32
  }
  func.func @transform_3(%arg0: i32, %arg1: i32) -> (i32, i32) {
    %c0_i32 = arith.constant 0 : i32
    %c0_i32_0 = arith.constant 0 : i32
    %c0_i32_1 = arith.constant 0 : i32
    return %c0_i32, %c0_i32_0 : i32, i32
  }
  func.func @transform_4(%arg0: i32, %arg1: i32) -> (i32, i32) {
    %c0_i32 = arith.constant 0 : i32
    %c0_i32_0 = arith.constant 0 : i32
    %c0_i32_1 = arith.constant 0 : i32
    return %c0_i32, %c0_i32_0 : i32, i32
  }
  func.func @transform_5(%arg0: i32, %arg1: i32) -> (i32, i32) {
    %c0_i32 = arith.constant 0 : i32
    %c0_i32_0 = arith.constant 0 : i32
    %c0_i32_1 = arith.constant 0 : i32
    return %c0_i32, %c0_i32_0 : i32, i32
  }
  func.func @transform_6(%arg0: i32, %arg1: i32) -> (i32, i32) {
    %c0_i32 = arith.constant 0 : i32
    %c0_i32_0 = arith.constant 0 : i32
    return %arg0, %c0_i32 : i32, i32
  }
}

</mosaic_0001>

<bundles_post_ra>
// kernel: tpu_custom_call.1
= control target key start
LH: loop header
LB: loop body
LE: loop exit
PB: predicated region body
PF: predicated region fallthrough
CT: control target
= control target key end

     0   :  { %11 = vsyncpa [#allocation4], 0  ;;  %s6960_s0 = inlined_call_operand.hbm [shape: bf16[8,4,256], index: 0, kind: input, shape index: {}]   ;;  %s6961_s1 = inlined_call_operand.hbm [shape: f32[4,2048], index: 1, kind: input, shape index: {}]   ;;  %s6962_s2 = inlined_call_operand.hbm [shape: bf16[2048,512], index: 2, kind: input, shape index: {}]   ;;  %s6963_s3 = inlined_call_operand.hbm [shape: f32[1,512], index: 3, kind: input, shape index: {}]   ;;  %s6964_s4 = inlined_call_operand.hbm [shape: bf16[512,128], index: 4, kind: input, shape index: {}]   ;;  %s6965_s5 = inlined_call_operand.hbm [shape: f32[1,128], index: 5, kind: input, shape index: {}]   ;;  %s6966_s6 = inlined_call_operand.hbm [shape: f32[8,128], index: 6, kind: output, shape index: {}]  }
   0x1   :  { %12 = vsyncpa [#allocation7], 0 }
   0x2   :  { %13 = vsyncpa [#allocation10], 0 }
   0x3   :  { %14 = vsyncpa [#allocation13], 0 }
   0x4   :  { %15 = vsyncpa [#allocation5], 0  ;;  %s6716_s21 = smov [#allocation6]   ;;  %s6717_s23 = smov [#allocation9]  }
   0x5   :  { %s34_s22 = sshll.u32 %s6716_s21, 4  ;;  %s56_s24 = sshll.u32 %s6717_s23, 4  ;;  %s35_s22 = int_to_ptr.vmem [resolvable:$true] %s34_s22  ;;  %s57_s24 = int_to_ptr.vmem [resolvable:$true] %s56_s24 }
   0x6   :  { %s6552_s27 = scalar_lea.hbm %s6961_s1, 1024 }
   0x7   :  { %p6553_p0 = scmp.ne.s32.totalorder %s6961_s1, %s6552_s27  ;;  %p6556_p1 = scmp.lt.u32.totalorder %s6552_s27, %s6961_s1 }
   0x9   :  { %p6558_p2 = pnand %p6556_p1, %p6553_p0 }
   0xb   :  { %6561 = shalt.err (!%p6558_p2)
}
   0xc   :  { %s6562_s8 = scalar_lea.vmem %s35_s22, 1024  ;;  %p6567_p4 = scmp.lt.s32.totalorder %s35_s22, %s35_s22 }
   0xd   :  { %p6563_p3 = scmp.ne.s32.totalorder %s35_s22, %s6562_s8  ;;  %p6568_p5 = scmp.lt.s32.totalorder %s6562_s8, %s6562_s8 }
   0xf   :  { %p6569_p6 = por %p6568_p5, %p6567_p4 }
  0x11   :  { %p6570_p7 = pnand %p6569_p6, %p6563_p3 }
  0x13   :  { %6573 = shalt.err (!%p6570_p7)
}
  0x14   :  { %37 = dma.hbm_to_vmem [thread:$0]  %s6961_s1, 1024, %s35_s22, [#allocation7]  }
  0x15   :  { %s6574_s13 = scalar_lea.hbm %s6963_s3, 64 }
  0x16   :  { %p6575_p8 = scmp.ne.s32.totalorder %s6963_s3, %s6574_s13  ;;  %p6578_p9 = scmp.lt.u32.totalorder %s6574_s13, %s6963_s3 }
  0x18   :  { %p6580_p10 = pnand %p6578_p9, %p6575_p8 }
  0x1a   :  { %6583 = shalt.err (!%p6580_p10)
}
  0x1b   :  { %s6584_s18 = scalar_lea.vmem %s57_s24, 64  ;;  %p6589_p12 = scmp.lt.s32.totalorder %s57_s24, %s57_s24 }
  0x1c   :  { %p6585_p11 = scmp.ne.s32.totalorder %s57_s24, %s6584_s18  ;;  %p6590_p13 = scmp.lt.s32.totalorder %s6584_s18, %s6584_s18 }
  0x1e   :  { %p6591_p0 = por %p6590_p13, %p6589_p12 }
  0x20   :  { %p6592_p1 = pnand %p6591_p0, %p6585_p11 }
  0x22   :  { %6595 = shalt.err (!%p6592_p1)
}
  0x23   :  { %59 = dma.hbm_to_vmem [thread:$0]  %s6963_s3, 64, %s57_s24, [#allocation10]  }
  0x24   :  { %s6718_s20 = smov [#allocation3]   ;;  %s6596_s25 = scalar_lea.hbm %s6960_s0, 512 }
  0x25   :  { %s21_s21 = sshll.u32 %s6718_s20, 4  ;;  %p6597_p2 = scmp.ne.s32.totalorder %s6960_s0, %s6596_s25  ;;  %s22_s21 = int_to_ptr.vmem [resolvable:$true] %s21_s21 }
  0x26   :  { %p6600_p3 = scmp.lt.u32.totalorder %s6596_s25, %s6960_s0 }
  0x28   :  { %p6602_p4 = pnand %p6600_p3, %p6597_p2 }
  0x2a   :  { %6605 = shalt.err (!%p6602_p4)
}
  0x2b   :  { %s6606_s30 = scalar_lea.vmem %s22_s21, 512  ;;  %p6611_p6 = scmp.lt.s32.totalorder %s22_s21, %s22_s21 }
  0x2c   :  { %p6607_p5 = scmp.ne.s32.totalorder %s22_s21, %s6606_s30  ;;  %p6612_p7 = scmp.lt.s32.totalorder %s6606_s30, %s6606_s30 }
  0x2e   :  { %p6613_p8 = por %p6612_p7, %p6611_p6 }
  0x30   :  { %p6614_p9 = pnand %p6613_p8, %p6607_p5 }
  0x32   :  { %6617 = shalt.err (!%p6614_p9)
}
  0x33   :  { %s6719_s3 = smov 64   ;;  %s6720_s24 = smov 4  }
  0x34   :  { %27 = dma.hbm_to_vmem [thread:$0]  %s6960_s0, 512, %s22_s21, [#allocation4], %s6719_s3, %s6719_s3, %s6720_s24  }
  0x35   :  { %s6721_s9 = smov [#allocation8]   ;;  %s6618_s13 = scalar_lea.hbm %s6962_s2, 65536 }
  0x36   :  { %s43_s10 = sshll.u32 %s6721_s9, 4  ;;  %p6619_p10 = scmp.ne.s32.totalorder %s6962_s2, %s6618_s13  ;;  %s44_s10 = int_to_ptr.vmem [resolvable:$true] %s43_s10 }
  0x37   :  { %p6622_p11 = scmp.lt.u32.totalorder %s6618_s13, %s6962_s2 }
  0x39   :  { %p6624_p12 = pnand %p6622_p11, %p6619_p10 }
  0x3b   :  { %6627 = shalt.err (!%p6624_p12)
}
  0x3c   :  { %s6628_s18 = scalar_lea.vmem %s44_s10, 65536  ;;  %p6633_p0 = scmp.lt.s32.totalorder %s44_s10, %s44_s10 }
  0x3d   :  { %p6629_p13 = scmp.ne.s32.totalorder %s44_s10, %s6628_s18  ;;  %p6634_p1 = scmp.lt.s32.totalorder %s6628_s18, %s6628_s18 }
  0x3f   :  { %p6635_p2 = por %p6634_p1, %p6633_p0 }
  0x41   :  { %p6636_p3 = pnand %p6635_p2, %p6629_p13 }
  0x43   :  { %6639 = shalt.err (!%p6636_p3)
}
  0x44   :  { %s6722_s0 = smov 256   ;;  %s6723_s1 = smov 16  }
  0x45   :  { %49 = dma.hbm_to_vmem [thread:$0]  %s6962_s2, 65536, %s44_s10, [#allocation7], %s6722_s0, %s6722_s0, %s6723_s1  }
  0x46   :  { %s6724_s21 = smov [#allocation11]   ;;  %s6725_s23 = smov [#allocation12]  }
  0x47   :  { %s65_s22 = sshll.u32 %s6724_s21, 4  ;;  %s78_s25 = sshll.u32 %s6725_s23, 4  ;;  %s66_s22 = int_to_ptr.vmem [resolvable:$true] %s65_s22  ;;  %s79_s25 = int_to_ptr.vmem [resolvable:$true] %s78_s25 }
  0x48   :  { %s6640_s28 = scalar_lea.hbm %s6964_s4, 4096 }
  0x49   :  { %p6641_p4 = scmp.ne.s32.totalorder %s6964_s4, %s6640_s28  ;;  %p6644_p5 = scmp.lt.u32.totalorder %s6640_s28, %s6964_s4 }
  0x4b   :  { %p6646_p6 = pnand %p6644_p5, %p6641_p4 }
  0x4d   :  { %6649 = shalt.err (!%p6646_p6)
}
  0x4e   :  { %s6650_s2 = scalar_lea.vmem %s66_s22, 4096  ;;  %p6655_p8 = scmp.lt.s32.totalorder %s66_s22, %s66_s22 }
  0x4f   :  { %p6651_p7 = scmp.ne.s32.totalorder %s66_s22, %s6650_s2  ;;  %p6656_p9 = scmp.lt.s32.totalorder %s6650_s2, %s6650_s2 }
  0x51   :  { %p6657_p10 = por %p6656_p9, %p6655_p8 }
  0x53   :  { %p6658_p11 = pnand %p6657_p10, %p6651_p7 }
  0x55   :  { %6661 = shalt.err (!%p6658_p11)
}
  0x56   :  { %71 = dma.hbm_to_vmem [thread:$0]  %s6964_s4, 4096, %s66_s22, [#allocation10], %s6719_s3, %s6719_s3, %s6720_s24  }
  0x57   :  { %s6662_s13 = scalar_lea.hbm %s6965_s5, 16 }
  0x58   :  { %p6663_p12 = scmp.ne.s32.totalorder %s6965_s5, %s6662_s13  ;;  %p6666_p13 = scmp.lt.u32.totalorder %s6662_s13, %s6965_s5 }
  0x5a   :  { %p6668_p0 = pnand %p6666_p13, %p6663_p12 }
  0x5c   :  { %6671 = shalt.err (!%p6668_p0)
}
  0x5d   :  { %s6672_s18 = scalar_lea.vmem %s79_s25, 16  ;;  %s6676_s0 = scalar_lea.vmem %s79_s25, 32 }
  0x5e   :  { %p6673_p1 = scmp.ne.s32.totalorder %s79_s25, %s6672_s18  ;;  %p6677_p2 = scmp.lt.s32.totalorder %s79_s25, %s79_s25 }
  0x5f   :  { %p6678_p3 = scmp.lt.s32.totalorder %s6676_s0, %s6672_s18 }
  0x61   :  { %p6679_p4 = por %p6678_p3, %p6677_p2 }
  0x63   :  { %p6680_p5 = pnand %p6679_p4, %p6673_p1 }
  0x65   :  { %6683 = shalt.err (!%p6680_p5)
}
  0x66   :  { %81 = dma.hbm_to_vmem [thread:$0]  %s6965_s5, 16, %s79_s25, [#allocation13]  }
  0x67   :  { %6706 = dma.done.wait [#allocation4], 512  }
  0x68   :  { %6707 = vsyncadd [#allocation4], 4294966784 }
  0x69   :  { %6708 = dma.done.wait [#allocation7], 66560  }
  0x6a   :  { %6709 = vsyncadd [#allocation7], 4294900736 }
  0x6b   :  { %6710 = dma.done.wait [#allocation10], 4160  }
  0x6c   :  { %6711 = vsyncadd [#allocation10], 4294963136 }
  0x6d   :  { %6712 = dma.done.wait [#allocation13], 16  }
  0x6e   :  { %6713 = vsyncadd [#allocation13], 4294967280  ;;  %v6726_v0 = vmov 0.0   ;;  %v5610_v1 = vld [vmem:[#allocation3] sm:$0xff]   ;;  %v5625_v2 = vld [vmem:[#allocation3 + $0x8] sm:$0xff]   ;;  %vm196_vm0 = vcmask 1043456  }
  0x6f   :  { %105 = vst [vmem:[#allocation2] sm:$0xf] %v6726_v0  ;;  %106 = vst [vmem:[#allocation2 + $0x4] sm:$0xf] %v6726_v0  ;;  %400 = vmatprep.mubr.f32.mxu0 %v6726_v0  ;;  %471 = vmatprep.mubr.f32.mxu1 %v6726_v0  ;;  %v5626_v3 = vld [vmem:[#allocation3 + $0x10] sm:$0xff]   ;;  %v5611_v4 = vunpack.c.l.bf16 %v5610_v1  ;;  %v5615_v5 = vunpack.c.l.bf16 %v5625_v2  ;;  %v5612_v6 = vunpack.c.h.bf16 %v5610_v1  ;;  %v5616_v7 = vunpack.c.h.bf16 %v5625_v2  ;;  %v5627_v18 = vld [vmem:[#allocation3 + $0x18] sm:$0xff]  }
  0x70   :  { %107 = vst [vmem:[#allocation2 + $0x8] sm:$0xf] %v6726_v0  ;;  %108 = vst [vmem:[#allocation2 + $0xc] sm:$0xf] %v6726_v0  ;;  %v5619_v12 = vunpack.c.l.bf16 %v5626_v3  ;;  %v5620_v13 = vunpack.c.h.bf16 %v5626_v3  ;;  %v5623_v23 = vunpack.c.l.bf16 %v5627_v18  ;;  %v5624_v24 = vunpack.c.h.bf16 %v5627_v18  ;;  %v221_v61 = vld [vmem:[#allocation6] sm:$0xff]  ;;  %v222_v62 = vld [vmem:[#allocation6 + $0x8] sm:$0xff] }
  0x71   :  { %109 = vst [vmem:[#allocation2 + $0x10] sm:$0xf] %v6726_v0  ;;  %110 = vst [vmem:[#allocation2 + $0x14] sm:$0xf] %v6726_v0  ;;  %v137_v14 = vrot.slane %v5611_v4, 4  ;;  %v139_v15 = vrot.slane %v5615_v5, 4  ;;  %v293_v63 = vcombine.high %v221_v61, %v221_v61  ;;  %v294_v1 = vcombine.high %v222_v62, %v222_v62 }
  0x72   :  { %111 = vst [vmem:[#allocation2 + $0x18] sm:$0xf] %v6726_v0  ;;  %112 = vst [vmem:[#allocation2 + $0x1c] sm:$0xf] %v6726_v0  ;;  %v138_v16 = vrot.slane %v5612_v6, 4  ;;  %v140_v17 = vrot.slane %v5616_v7, 4 }
  0x73   :  { %v141_v19 = vrot.slane %v5619_v12, 4  ;;  %v142_v21 = vrot.slane %v5620_v13, 4  ;;  %v153_v25 = vadd.f32 %v5611_v4, %v137_v14  ;;  %v155_v26 = vadd.f32 %v5615_v5, %v139_v15  ;;  %5040 = vmatprep.subr.msk.mxu0 %vm196_vm0, %v293_v63  ;;  %5043 = vmatprep.subr.msk.mxu1 %vm196_vm0, %v294_v1  ;;  %v223_v2 = vld [vmem:[#allocation6 + $0x10] sm:$0xff]  ;;  %v224_v3 = vld [vmem:[#allocation6 + $0x18] sm:$0xff]  ;;  %s6727_s5 = smov [#allocation14]  }
  0x74   :  { %v154_v27 = vadd.f32 %v5612_v6, %v138_v16  ;;  %v156_v28 = vadd.f32 %v5616_v7, %v140_v17  ;;  %v143_v33 = vrot.slane %v5623_v23, 4  ;;  %v144_v34 = vrot.slane %v5624_v24, 4  ;;  %5041 = vmatpush1.msk.msra.mxu0 %vm196_vm0, %v221_v61  ;;  %5044 = vmatpush1.msk.msra.mxu1 %vm196_vm0, %v222_v62  ;;  %v5787_v61 = vld [vmem:[#allocation8 + $0xac] ss:$16 sps:$4 sm:$0xff]   ;;  %v5782_v62 = vld [vmem:[#allocation8 + $0xa0] ss:$16 sps:$4 sm:$0xff]  }
  0x75   :  { %v157_v31 = vadd.f32 %v5619_v12, %v141_v19  ;;  %v158_v32 = vadd.f32 %v5620_v13, %v142_v21  ;;  %v295_v4 = vcombine.high %v223_v2, %v223_v2  ;;  %v296_v5 = vcombine.high %v224_v3, %v224_v3  ;;  %v5785_v63 = vld [vmem:[#allocation8 + $0xa8] ss:$16 sps:$4 sm:$0xff]   ;;  %v5790_v1 = vld [vmem:[#allocation8 + $0xc4] ss:$16 sps:$4 sm:$0xff]   ;;  %s5028_s24 = sshll.u32 %s6727_s5, 4  ;;  %s5029_s24 = int_to_ptr.vmem [resolvable:$true] %s5028_s24 }
  0x76   :  { %v161_v8 = vld [vmem:[#allocation2] sm:$0xf]  ;;  %v162_v10 = vld [vmem:[#allocation2 + $0x4] sm:$0xf]  ;;  %v159_v41 = vadd.f32 %v5623_v23, %v143_v33  ;;  %v160_v42 = vadd.f32 %v5624_v24, %v144_v34  ;;  %v237_v6 = vlaneseq  ;;  %vm271_vm1 = vcmask 1041409   ;;  %v227_v34 = vld [vmem:[#allocation6 + $0x30] sm:$0xff]  ;;  %p6689_p7 = scmp.lt.s32.totalorder %s5029_s24, %s5029_s24 }
  0x77   :  { %v163_v9 = vld [vmem:[#allocation2 + $0x8] sm:$0xf]  ;;  %v164_v11 = vld [vmem:[#allocation2 + $0xc] sm:$0xf]  ;;  %v169_v35 = vadd.f32 %v161_v8, %v153_v25  ;;  %v170_v37 = vadd.f32 %v162_v10, %v154_v27  ;;  %5046 = vmatprep.subr.msk.mxu0 %vm196_vm0, %v295_v4  ;;  %5049 = vmatprep.subr.msk.mxu1 %vm196_vm0, %v296_v5  ;;  %vm273_vm2 = vcmask 1042434   ;;  %vm275_vm3 = vcmask 1043459  }
  0x78   :  { %v165_v20 = vld [vmem:[#allocation2 + $0x10] sm:$0xf]  ;;  %v166_v22 = vld [vmem:[#allocation2 + $0x14] sm:$0xf]  ;;  %v171_v36 = vadd.f32 %v163_v9, %v155_v26  ;;  %v172_v38 = vadd.f32 %v164_v11, %v156_v28  ;;  %v238_v7 = vand.u32 127, %v237_v6  ;;  %v6865_v8 = vshrl.u32 %v237_v6, 7 }
  0x79   :  { %v167_v29 = vld [vmem:[#allocation2 + $0x18] sm:$0xf]  ;;  %v168_v30 = vld [vmem:[#allocation2 + $0x1c] sm:$0xf]  ;;  %v173_v39 = vadd.f32 %v165_v20, %v157_v31  ;;  %v174_v40 = vadd.f32 %v166_v22, %v158_v32  ;;  %177 = vst [vmem:[#allocation2] sm:$0xf] %v169_v35 }
  0x7a   :  { %179 = vst [vmem:[#allocation2 + $0x8] sm:$0xf] %v171_v36  ;;  %178 = vst [vmem:[#allocation2 + $0x4] sm:$0xf] %v170_v37  ;;  %v175_v43 = vadd.f32 %v167_v29, %v159_v41  ;;  %v176_v44 = vadd.f32 %v168_v30, %v160_v42  ;;  %v241_v11 = vsub.s32 %v238_v7, %v6865_v8  ;;  %vm277_vm4 = vcmask 1044484   ;;  %v225_v26 = vld [vmem:[#allocation6 + $0x20] sm:$0xff] }
  0x7b   :  { %180 = vst [vmem:[#allocation2 + $0xc] sm:$0xf] %v172_v38  ;;  %181 = vst [vmem:[#allocation2 + $0x10] sm:$0xf] %v173_v39  ;;  %vm279_vm5 = vcmask 1045509   ;;  %v226_v27 = vld [vmem:[#allocation6 + $0x28] sm:$0xff]  ;;  %v297_v37 = vcombine.high %v225_v26, %v225_v26  ;;  %v299_v39 = vcombine.high %v227_v34, %v227_v34 }
  0x7c   :  { %182 = vst [vmem:[#allocation2 + $0x14] sm:$0xf] %v174_v40  ;;  %183 = vst [vmem:[#allocation2 + $0x18] sm:$0xf] %v175_v43  ;;  %vm281_vm6 = vcmask 1046534   ;;  %vm283_vm7 = vcmask 1047559   ;;  %v298_v38 = vcombine.high %v226_v27, %v226_v27 }
  0x7d   :  { %184 = vst [vmem:[#allocation2 + $0x1c] sm:$0xf] %v176_v44  ;;  %vm301_vm8 = vcmask 31744   ;;  %v228_v35 = vld [vmem:[#allocation6 + $0x38] sm:$0xff]  ;;  %v5754_v41 = vld [vmem:[#allocation8 + $0x4] ss:$16 sps:$4 sm:$0xff]  }
  0x7e   :  { %v300_v40 = vcombine.high %v228_v35, %v228_v35  ;;  %v5757_v42 = vld [vmem:[#allocation8 + $0xc] ss:$16 sps:$4 sm:$0xff]   ;;  %v5752_v43 = vld [vmem:[#allocation8] ss:$16 sps:$4 sm:$0xff]   ;;  %v5755_v44 = vld [vmem:[#allocation8 + $0x8] ss:$16 sps:$4 sm:$0xff]  }
  0x7f   :  { %v5791_v4 = vld [vmem:[#allocation8 + $0xc8] ss:$16 sps:$4 sm:$0xff]   ;;  %v5796_v5 = vld [vmem:[#allocation8 + $0xe4] ss:$16 sps:$4 sm:$0xff]   ;;  %v5799_v6 = vld [vmem:[#allocation8 + $0xec] ss:$16 sps:$4 sm:$0xff]  }
  0x80   :  { %v188_v45 = vld [vmem:[#allocation2] sm:$0xf]  ;;  %s6684_s1 = scalar_lea.vmem %s5029_s24, 128 }
  0x81   :  { %v190_v46 = vld [vmem:[#allocation2 + $0x8] sm:$0xf]  ;;  %v189_v47 = vld [vmem:[#allocation2 + $0x4] sm:$0xf]  ;;  %v197_v48 = vsel %vm196_vm0, %v188_v45, 0.0  ;;  %p6685_p6 = scmp.ne.s32.totalorder %s5029_s24, %s6684_s1  ;;  %p6690_p8 = scmp.lt.s32.totalorder %s6684_s1, %s6684_s1 }
  0x82   :  { %v203_v49 = vsel %vm196_vm0, %v190_v46, 0.0  ;;  %v191_v50 = vld [vmem:[#allocation2 + $0xc] sm:$0xf]  ;;  %198 = vadd.xlane.f32.xlu0 %v197_v48  ;;  %v200_v51 = vsel %vm196_vm0, %v189_v47, 0.0  ;;  %v192_v53 = vld [vmem:[#allocation2 + $0x10] sm:$0xf] }
  0x83   :  { %204 = vadd.xlane.f32.xlu1 %v203_v49  ;;  %v206_v52 = vsel %vm196_vm0, %v191_v50, 0.0  ;;  %v193_v54 = vld [vmem:[#allocation2 + $0x14] sm:$0xf]  ;;  %v194_v55 = vld [vmem:[#allocation2 + $0x18] sm:$0xf]  ;;  %v209_v57 = vsel %vm196_vm0, %v192_v53, 0.0  ;;  %p6691_p9 = por %p6690_p8, %p6689_p7 }
  0x84   :  { %v195_v56 = vld [vmem:[#allocation2 + $0x1c] sm:$0xf]  ;;  %v212_v58 = vsel %vm196_vm0, %v193_v54, 0.0  ;;  %v215_v59 = vsel %vm196_vm0, %v194_v55, 0.0  ;;  %v5760_v45 = vld [vmem:[#allocation8 + $0x24] ss:$16 sps:$4 sm:$0xff]  }
  0x85   :  { %v218_v60 = vsel %vm196_vm0, %v195_v56, 0.0  ;;  %v5763_v46 = vld [vmem:[#allocation8 + $0x2c] ss:$16 sps:$4 sm:$0xff]   ;;  %v5758_v47 = vld [vmem:[#allocation8 + $0x20] ss:$16 sps:$4 sm:$0xff]   ;;  %p6692_p10 = pnand %p6691_p9, %p6685_p6 }
  0x86   :  { %201 = vadd.xlane.f32.xlu0 %v200_v51  ;;  %v5761_v48 = vld [vmem:[#allocation8 + $0x28] ss:$16 sps:$4 sm:$0xff]   ;;  %v5766_v49 = vld [vmem:[#allocation8 + $0x44] ss:$16 sps:$4 sm:$0xff]   ;;  %v5769_v50 = vld [vmem:[#allocation8 + $0x4c] ss:$16 sps:$4 sm:$0xff]  }
  0x87   :  { %207 = vadd.xlane.f32.xlu1 %v206_v52  ;;  %v5764_v51 = vld [vmem:[#allocation8 + $0x40] ss:$16 sps:$4 sm:$0xff]   ;;  %v5767_v52 = vld [vmem:[#allocation8 + $0x48] ss:$16 sps:$4 sm:$0xff]   ;;  %v5772_v53 = vld [vmem:[#allocation8 + $0x64] ss:$16 sps:$4 sm:$0xff]  }
  0x88   :  { %v5775_v54 = vld [vmem:[#allocation8 + $0x6c] ss:$16 sps:$4 sm:$0xff]   ;;  %v5773_v55 = vld [vmem:[#allocation8 + $0x68] ss:$16 sps:$4 sm:$0xff]   ;;  %v5778_v56 = vld [vmem:[#allocation8 + $0x84] ss:$16 sps:$4 sm:$0xff]  }
  0x89   :  { %v5794_v7 = vld [vmem:[#allocation8 + $0xe0] ss:$16 sps:$4 sm:$0xff]  }
  0x8a   :  { %210 = vadd.xlane.f32.xlu0 %v209_v57  ;;  %v5781_v57 = vld [vmem:[#allocation8 + $0x8c] ss:$16 sps:$4 sm:$0xff]  }
  0x8b   :  { %213 = vadd.xlane.f32.xlu1 %v212_v58  ;;  %v5776_v58 = vld [vmem:[#allocation8 + $0x80] ss:$16 sps:$4 sm:$0xff]  }
  0x8e   :  { %216 = vadd.xlane.f32.xlu0 %v215_v59  ;;  %v5779_v59 = vld [vmem:[#allocation8 + $0x88] ss:$16 sps:$4 sm:$0xff]  }
  0x8f   :  { %219 = vadd.xlane.f32.xlu1 %v218_v60  ;;  %v5784_v60 = vld [vmem:[#allocation8 + $0xa4] ss:$16 sps:$4 sm:$0xff]  }
 0x10f   :  { %v199_v9 = vpop.xlane.xlu0 %198 }
 0x110   :  { %v205_v10 = vpop.xlane.xlu1 %204  ;;  %v242_v14 = vrot.slane %v199_v9, %v241_v11  ;;  %v5797_v9 = vld [vmem:[#allocation8 + $0xe8] ss:$16 sps:$4 sm:$0xff]  }
 0x111   :  { %v250_v17 = vrot.slane %v205_v10, %v241_v11  ;;  %v5802_v10 = vld [vmem:[#allocation8 + $0x104] ss:$16 sps:$4 sm:$0xff]  }
 0x113   :  { %v202_v12 = vpop.xlane.xlu0 %201 }
 0x114   :  { %v208_v13 = vpop.xlane.xlu1 %207  ;;  %v246_v15 = vrot.slane %v202_v12, %v241_v11  ;;  %v5800_v12 = vld [vmem:[#allocation8 + $0x100] ss:$16 sps:$4 sm:$0xff]  }
 0x115   :  { %v254_v16 = vrot.slane %v208_v13, %v241_v11  ;;  %v5803_v13 = vld [vmem:[#allocation8 + $0x108] ss:$16 sps:$4 sm:$0xff]  }
 0x116   :  { %v272_v18 = vsel %vm271_vm1, %v246_v15, %v242_v14  ;;  %v5808_v14 = vld [vmem:[#allocation8 + $0x124] ss:$16 sps:$4 sm:$0xff]   ;;  %v5811_v15 = vld [vmem:[#allocation8 + $0x12c] ss:$16 sps:$4 sm:$0xff]  }
 0x117   :  { %v274_v19 = vsel %vm273_vm2, %v250_v17, %v272_v18  ;;  %v211_v20 = vpop.xlane.xlu0 %210  ;;  %v5809_v17 = vld [vmem:[#allocation8 + $0x128] ss:$16 sps:$4 sm:$0xff]   ;;  %v5814_v18 = vld [vmem:[#allocation8 + $0x144] ss:$16 sps:$4 sm:$0xff]  }
 0x118   :  { %v214_v21 = vpop.xlane.xlu1 %213  ;;  %v276_v22 = vsel %vm275_vm3, %v254_v16, %v274_v19  ;;  %v258_v23 = vrot.slane %v211_v20, %v241_v11  ;;  %v5806_v16 = vld [vmem:[#allocation8 + $0x120] ss:$16 sps:$4 sm:$0xff]   ;;  %v5817_v19 = vld [vmem:[#allocation8 + $0x14c] ss:$16 sps:$4 sm:$0xff]  }
 0x119   :  { %v262_v24 = vrot.slane %v214_v21, %v241_v11  ;;  %v5812_v20 = vld [vmem:[#allocation8 + $0x140] ss:$16 sps:$4 sm:$0xff]   ;;  %v5815_v21 = vld [vmem:[#allocation8 + $0x148] ss:$16 sps:$4 sm:$0xff]  }
 0x11a   :  { %v278_v25 = vsel %vm277_vm4, %v258_v23, %v276_v22  ;;  %v5820_v22 = vld [vmem:[#allocation8 + $0x164] ss:$16 sps:$4 sm:$0xff]   ;;  %v5823_v23 = vld [vmem:[#allocation8 + $0x16c] ss:$16 sps:$4 sm:$0xff]  }
 0x11b   :  { %v217_v28 = vpop.xlane.xlu0 %216  ;;  %v280_v32 = vsel %vm279_vm5, %v262_v24, %v278_v25  ;;  %v5818_v24 = vld [vmem:[#allocation8 + $0x160] ss:$16 sps:$4 sm:$0xff]   ;;  %v5821_v25 = vld [vmem:[#allocation8 + $0x168] ss:$16 sps:$4 sm:$0xff]  }
 0x11c   :  { %v220_v29 = vpop.xlane.xlu1 %219  ;;  %v266_v30 = vrot.slane %v217_v28, %v241_v11  ;;  %v5824_v28 = vld [vmem:[#allocation8 + $0x180] ss:$16 sps:$4 sm:$0xff]  }
 0x11d   :  { %v270_v31 = vrot.slane %v220_v29, %v241_v11  ;;  %v5805_v11 = vld [vmem:[#allocation8 + $0x10c] ss:$16 sps:$4 sm:$0xff]   ;;  %v5827_v29 = vld [vmem:[#allocation8 + $0x188] ss:$16 sps:$4 sm:$0xff]  }
 0x11e   :  { %v282_v33 = vsel %vm281_vm6, %v266_v30, %v280_v32  ;;  %v5832_v30 = vld [vmem:[#allocation8 + $0x1a4] ss:$16 sps:$4 sm:$0xff]   ;;  %v5830_v32 = vld [vmem:[#allocation8 + $0x1a0] ss:$16 sps:$4 sm:$0xff]  }
 0x11f   :  { %v284_v36 = vsel %vm283_vm7, %v270_v31, %v282_v33  ;;  %v5835_v31 = vld [vmem:[#allocation8 + $0x1ac] ss:$16 sps:$4 sm:$0xff]   ;;  %v5833_v33 = vld [vmem:[#allocation8 + $0x1a8] ss:$16 sps:$4 sm:$0xff]  }
 0x120   :  { %5042 = vmatmul.mubr.msk.f32.vlgmr.msra.gmra.mrb[0].mxu0 %vm301_vm8, %v284_v36  ;;  %5045 = vmatmul.mubr.msk.f32.vlgmr.msra.gmra.mrb[0].mxu1 %vm301_vm8, %v284_v36 }
 0x121   :  { %5047 = vmatpush1.msk.msra.mxu0 %vm196_vm0, %v223_v2  ;;  %542 = vmatprep.mubr.f32.mxu0 %v6726_v0  ;;  %v5793_v2 = vld [vmem:[#allocation8 + $0xcc] ss:$16 sps:$4 sm:$0xff]  }
 0x122   :  { %5050 = vmatpush1.msk.msra.mxu1 %vm196_vm0, %v224_v3  ;;  %613 = vmatprep.mubr.f32.mxu1 %v6726_v0  ;;  %v5788_v3 = vld [vmem:[#allocation8 + $0xc0] ss:$16 sps:$4 sm:$0xff]  }
 0x123   :  { %5052 = vmatprep.subr.msk.mxu0 %vm196_vm0, %v297_v37  ;;  %5055 = vmatprep.subr.msk.mxu1 %vm196_vm0, %v298_v38  ;;  %v5839_v37 = vld [vmem:[#allocation8 + $0x1c8] ss:$16 sps:$4 sm:$0xff]   ;;  %v5844_v38 = vld [vmem:[#allocation8 + $0x1e4] ss:$16 sps:$4 sm:$0xff]  }
 0x124   :  { %5048 = vmatmul.mubr.msk.f32.vlgmr.msra.gmra.mrb[2].mxu0 %vm301_vm8, %v284_v36  ;;  %5051 = vmatmul.mubr.msk.f32.vlgmr.msra.gmra.mrb[2].mxu1 %vm301_vm8, %v284_v36 }
 0x125   :  { %5053 = vmatpush1.msk.msra.mxu0 %vm196_vm0, %v225_v26  ;;  %684 = vmatprep.mubr.f32.mxu0 %v6726_v0  ;;  %v5826_v26 = vld [vmem:[#allocation8 + $0x184] ss:$16 sps:$4 sm:$0xff]  }
 0x126   :  { %5056 = vmatpush1.msk.msra.mxu1 %vm196_vm0, %v226_v27  ;;  %755 = vmatprep.mubr.f32.mxu1 %v6726_v0  ;;  %v5829_v27 = vld [vmem:[#allocation8 + $0x18c] ss:$16 sps:$4 sm:$0xff]  }
 0x127   :  { %5058 = vmatprep.subr.msk.mxu0 %vm196_vm0, %v299_v39  ;;  %5061 = vmatprep.subr.msk.mxu1 %vm196_vm0, %v300_v40  ;;  %v5847_v39 = vld [vmem:[#allocation8 + $0x1ec] ss:$16 sps:$4 sm:$0xff]   ;;  %v5842_v40 = vld [vmem:[#allocation8 + $0x1e0] ss:$16 sps:$4 sm:$0xff]  }
 0x128   :  { %5054 = vmatmul.mubr.msk.f32.vlgmr.msra.gmra.mrb[4].mxu0 %vm301_vm8, %v284_v36  ;;  %5057 = vmatmul.mubr.msk.f32.vlgmr.msra.gmra.mrb[4].mxu1 %vm301_vm8, %v284_v36 }
 0x129   :  { %5059 = vmatpush1.msk.msra.mxu0 %vm196_vm0, %v227_v34  ;;  %826 = vmatprep.mubr.f32.mxu0 %v6726_v0  ;;  %v5838_v34 = vld [vmem:[#allocation8 + $0x1c4] ss:$16 sps:$4 sm:$0xff]  }
 0x12a   :  { %5062 = vmatpush1.msk.msra.mxu1 %vm196_vm0, %v228_v35  ;;  %897 = vmatprep.mubr.f32.mxu1 %v6726_v0  ;;  %v5770_v0 = vld [vmem:[#allocation8 + $0x60] ss:$16 sps:$4 sm:$0xff]   ;;  %v5841_v35 = vld [vmem:[#allocation8 + $0x1cc] ss:$16 sps:$4 sm:$0xff]  }
 0x12b   :  { %4014 = vmatprep.subr.bf16.mxu0 %v5754_v41  ;;  %4342 = vmatprep.subr.bf16.mxu1 %v5757_v42  ;;  %v5845_v41 = vld [vmem:[#allocation8 + $0x1e8] ss:$16 sps:$4 sm:$0xff]   ;;  %v5850_v42 = vld [vmem:[#allocation8 + $0x204] ss:$16 sps:$4 sm:$0xff]  }
 0x12c   :  { %5060 = vmatmul.mubr.msk.f32.vlgmr.msra.gmra.mrb[6].mxu0 %vm301_vm8, %v284_v36  ;;  %5063 = vmatmul.mubr.msk.f32.vlgmr.msra.gmra.mrb[6].mxu1 %vm301_vm8, %v284_v36  ;;  %v5836_v36 = vld [vmem:[#allocation8 + $0x1c0] ss:$16 sps:$4 sm:$0xff]  }
 0x12d   :  { %4015 = vmatpush1.bf16.msra.mxu0 %v5752_v43  ;;  %4343 = vmatpush1.bf16.msra.mxu1 %v5755_v44  ;;  %v5853_v43 = vld [vmem:[#allocation8 + $0x20c] ss:$16 sps:$4 sm:$0xff]  }
 0x12e   :  { %4016 = vmatprep.subr.bf16.mxu0 %v5760_v45  ;;  %4344 = vmatprep.subr.bf16.mxu1 %v5763_v46 }
 0x131   :  { %4017 = vmatpush1.bf16.msra.mxu0 %v5758_v47  ;;  %4345 = vmatpush1.bf16.msra.mxu1 %v5761_v48 }
 0x132   :  { %4018 = vmatprep.subr.bf16.mxu0 %v5766_v49  ;;  %4346 = vmatprep.subr.bf16.mxu1 %v5769_v50  ;;  %v5848_v49 = vld [vmem:[#allocation8 + $0x200] ss:$16 sps:$4 sm:$0xff]   ;;  %v5851_v50 = vld [vmem:[#allocation8 + $0x208] ss:$16 sps:$4 sm:$0xff]  }
 0x135   :  { %4019 = vmatpush1.bf16.msra.mxu0 %v5764_v51  ;;  %4347 = vmatpush1.bf16.msra.mxu1 %v5767_v52 }
 0x136   :  { %4020 = vmatprep.subr.bf16.mxu0 %v5772_v53  ;;  %4348 = vmatprep.subr.bf16.mxu1 %v5775_v54  ;;  %v5856_v54 = vld [vmem:[#allocation8 + $0x224] ss:$16 sps:$4 sm:$0xff]  }
 0x139   :  { %4021 = vmatpush1.bf16.msra.mxu0 %v5770_v0  ;;  %4349 = vmatpush1.bf16.msra.mxu1 %v5773_v55  ;;  %v5859_v0 = vld [vmem:[#allocation8 + $0x22c] ss:$16 sps:$4 sm:$0xff]  }
 0x13a   :  { %4022 = vmatprep.subr.bf16.mxu0 %v5778_v56  ;;  %4350 = vmatprep.subr.bf16.mxu1 %v5781_v57 }
 0x13d   :  { %4023 = vmatpush1.bf16.msra.mxu0 %v5776_v58  ;;  %4351 = vmatpush1.bf16.msra.mxu1 %v5779_v59  ;;  %v5854_v58 = vld [vmem:[#allocation8 + $0x220] ss:$16 sps:$4 sm:$0xff]   ;;  %v5857_v59 = vld [vmem:[#allocation8 + $0x228] ss:$16 sps:$4 sm:$0xff]  }
 0x13e   :  { %4024 = vmatprep.subr.bf16.mxu0 %v5784_v60  ;;  %4352 = vmatprep.subr.bf16.mxu1 %v5787_v61  ;;  %v5862_v60 = vld [vmem:[#allocation8 + $0x244] ss:$16 sps:$4 sm:$0xff]   ;;  %v5865_v61 = vld [vmem:[#allocation8 + $0x24c] ss:$16 sps:$4 sm:$0xff]  }
 0x141   :  { %4025 = vmatpush1.bf16.msra.mxu0 %v5782_v62  ;;  %4353 = vmatpush1.bf16.msra.mxu1 %v5785_v63 }
 0x142   :  { %4026 = vmatprep.subr.bf16.mxu0 %v5790_v1  ;;  %4354 = vmatprep.subr.bf16.mxu1 %v5793_v2 }
 0x145   :  { %4027 = vmatpush1.bf16.msra.mxu0 %v5788_v3  ;;  %4355 = vmatpush1.bf16.msra.mxu1 %v5791_v4  ;;  %v5860_v3 = vld [vmem:[#allocation8 + $0x240] ss:$16 sps:$4 sm:$0xff]   ;;  %v5863_v4 = vld [vmem:[#allocation8 + $0x248] ss:$16 sps:$4 sm:$0xff]  }
 0x146   :  { %4028 = vmatprep.subr.bf16.mxu0 %v5796_v5  ;;  %4356 = vmatprep.subr.bf16.mxu1 %v5799_v6  ;;  %v5868_v5 = vld [vmem:[#allocation8 + $0x264] ss:$16 sps:$4 sm:$0xff]   ;;  %v5871_v6 = vld [vmem:[#allocation8 + $0x26c] ss:$16 sps:$4 sm:$0xff]  }
 0x149   :  { %4029 = vmatpush1.bf16.msra.mxu0 %v5794_v7  ;;  %4357 = vmatpush1.bf16.msra.mxu1 %v5797_v9 }
 0x14a   :  { %4030 = vmatprep.subr.bf16.mxu0 %v5802_v10  ;;  %4358 = vmatprep.subr.bf16.mxu1 %v5805_v11 }
 0x14d   :  { %4031 = vmatpush1.bf16.msra.mxu0 %v5800_v12  ;;  %4359 = vmatpush1.bf16.msra.mxu1 %v5803_v13  ;;  %v5866_v12 = vld [vmem:[#allocation8 + $0x260] ss:$16 sps:$4 sm:$0xff]   ;;  %v5869_v13 = vld [vmem:[#allocation8 + $0x268] ss:$16 sps:$4 sm:$0xff]  }
 0x14e   :  { %4032 = vmatprep.subr.bf16.mxu0 %v5808_v14  ;;  %4360 = vmatprep.subr.bf16.mxu1 %v5811_v15  ;;  %v5874_v14 = vld [vmem:[#allocation8 + $0x284] ss:$16 sps:$4 sm:$0xff]   ;;  %v5877_v15 = vld [vmem:[#allocation8 + $0x28c] ss:$16 sps:$4 sm:$0xff]  }
 0x151   :  { %4033 = vmatpush1.bf16.msra.mxu0 %v5806_v16  ;;  %4361 = vmatpush1.bf16.msra.mxu1 %v5809_v17  ;;  %v5872_v16 = vld [vmem:[#allocation8 + $0x280] ss:$16 sps:$4 sm:$0xff]   ;;  %v5875_v17 = vld [vmem:[#allocation8 + $0x288] ss:$16 sps:$4 sm:$0xff]  }
 0x152   :  { %4034 = vmatprep.subr.bf16.mxu0 %v5814_v18  ;;  %4362 = vmatprep.subr.bf16.mxu1 %v5817_v19  ;;  %v5880_v18 = vld [vmem:[#allocation8 + $0x2a4] ss:$16 sps:$4 sm:$0xff]   ;;  %v5883_v19 = vld [vmem:[#allocation8 + $0x2ac] ss:$16 sps:$4 sm:$0xff]  }
 0x155   :  { %4035 = vmatpush1.bf16.msra.mxu0 %v5812_v20  ;;  %4363 = vmatpush1.bf16.msra.mxu1 %v5815_v21  ;;  %v5878_v20 = vld [vmem:[#allocation8 + $0x2a0] ss:$16 sps:$4 sm:$0xff]   ;;  %v5881_v21 = vld [vmem:[#allocation8 + $0x2a8] ss:$16 sps:$4 sm:$0xff]  }
 0x156   :  { %4036 = vmatprep.subr.bf16.mxu0 %v5820_v22  ;;  %4364 = vmatprep.subr.bf16.mxu1 %v5823_v23  ;;  %v5886_v22 = vld [vmem:[#allocation8 + $0x2c4] ss:$16 sps:$4 sm:$0xff]   ;;  %v5889_v23 = vld [vmem:[#allocation8 + $0x2cc] ss:$16 sps:$4 sm:$0xff]  }
 0x159   :  { %4037 = vmatpush1.bf16.msra.mxu0 %v5818_v24  ;;  %4365 = vmatpush1.bf16.msra.mxu1 %v5821_v25  ;;  %v5884_v24 = vld [vmem:[#allocation8 + $0x2c0] ss:$16 sps:$4 sm:$0xff]   ;;  %v5887_v25 = vld [vmem:[#allocation8 + $0x2c8] ss:$16 sps:$4 sm:$0xff]  }
 0x15a   :  { %4038 = vmatprep.subr.bf16.mxu0 %v5826_v26  ;;  %4366 = vmatprep.subr.bf16.mxu1 %v5829_v27  ;;  %v5892_v26 = vld [vmem:[#allocation8 + $0x2e4] ss:$16 sps:$4 sm:$0xff]   ;;  %v5895_v27 = vld [vmem:[#allocation8 + $0x2ec] ss:$16 sps:$4 sm:$0xff]  }
 0x15d   :  { %4039 = vmatpush1.bf16.msra.mxu0 %v5824_v28  ;;  %4367 = vmatpush1.bf16.msra.mxu1 %v5827_v29  ;;  %v5890_v28 = vld [vmem:[#allocation8 + $0x2e0] ss:$16 sps:$4 sm:$0xff]   ;;  %v5893_v29 = vld [vmem:[#allocation8 + $0x2e8] ss:$16 sps:$4 sm:$0xff]  }
 0x15e   :  { %4040 = vmatprep.subr.bf16.mxu0 %v5832_v30  ;;  %4368 = vmatprep.subr.bf16.mxu1 %v5835_v31  ;;  %v5898_v30 = vld [vmem:[#allocation8 + $0x304] ss:$16 sps:$4 sm:$0xff]   ;;  %v5901_v31 = vld [vmem:[#allocation8 + $0x30c] ss:$16 sps:$4 sm:$0xff]  }
 0x161   :  { %4041 = vmatpush1.bf16.msra.mxu0 %v5830_v32  ;;  %4369 = vmatpush1.bf16.msra.mxu1 %v5833_v33  ;;  %v5896_v32 = vld [vmem:[#allocation8 + $0x300] ss:$16 sps:$4 sm:$0xff]   ;;  %v5899_v33 = vld [vmem:[#allocation8 + $0x308] ss:$16 sps:$4 sm:$0xff]  }
 0x162   :  { %4042 = vmatprep.subr.bf16.mxu0 %v5838_v34  ;;  %4370 = vmatprep.subr.bf16.mxu1 %v5841_v35  ;;  %v5904_v34 = vld [vmem:[#allocation8 + $0x324] ss:$16 sps:$4 sm:$0xff]   ;;  %v5907_v35 = vld [vmem:[#allocation8 + $0x32c] ss:$16 sps:$4 sm:$0xff]  }
 0x165   :  { %4043 = vmatpush1.bf16.msra.mxu0 %v5836_v36  ;;  %4371 = vmatpush1.bf16.msra.mxu1 %v5839_v37  ;;  %v5902_v36 = vld [vmem:[#allocation8 + $0x320] ss:$16 sps:$4 sm:$0xff]   ;;  %v5905_v37 = vld [vmem:[#allocation8 + $0x328] ss:$16 sps:$4 sm:$0xff]  }
 0x166   :  { %4044 = vmatprep.subr.bf16.mxu0 %v5844_v38  ;;  %4372 = vmatprep.subr.bf16.mxu1 %v5847_v39  ;;  %v5910_v38 = vld [vmem:[#allocation8 + $0x344] ss:$16 sps:$4 sm:$0xff]   ;;  %v5913_v39 = vld [vmem:[#allocation8 + $0x34c] ss:$16 sps:$4 sm:$0xff]  }
 0x169   :  { %4045 = vmatpush1.bf16.msra.mxu0 %v5842_v40  ;;  %4373 = vmatpush1.bf16.msra.mxu1 %v5845_v41  ;;  %v5908_v40 = vld [vmem:[#allocation8 + $0x340] ss:$16 sps:$4 sm:$0xff]   ;;  %v5911_v41 = vld [vmem:[#allocation8 + $0x348] ss:$16 sps:$4 sm:$0xff]  }
 0x16a   :  { %4055 = vmatprep.subr.bf16.mxu0 %v5850_v42  ;;  %4383 = vmatprep.subr.bf16.mxu1 %v5853_v43  ;;  %v5916_v42 = vld [vmem:[#allocation8 + $0x364] ss:$16 sps:$4 sm:$0xff]   ;;  %v5919_v43 = vld [vmem:[#allocation8 + $0x36c] ss:$16 sps:$4 sm:$0xff]  }
 0x1f3   :  { %v402_v44 = vpop.f32.mrb[0].mxu0  ;;  %v6892_v45 = vpop.f32.mrb[0].mxu1 }
 0x1f4   :  { %v404_v46 = vpop.f32.mrb[1].mxu0  ;;  %v475_v47 = vpop.f32.mrb[1].mxu1  ;;  %v904_v51 = vpack.c.bf16 %v402_v44, %v402_v44  ;;  %v5914_v44 = vld [vmem:[#allocation8 + $0x360] ss:$16 sps:$4 sm:$0xff]  }
 0x1f5   :  { %v905_v48 = vpack.c.bf16 %v404_v46, %v404_v46  ;;  %v907_v55 = vpack.c.bf16 %v475_v47, %v475_v47  ;;  %v5917_v46 = vld [vmem:[#allocation8 + $0x368] ss:$16 sps:$4 sm:$0xff]   ;;  %v5922_v47 = vld [vmem:[#allocation8 + $0x384] ss:$16 sps:$4 sm:$0xff]  }
 0x1f7   :  { %v6894_v52 = vpop.f32.mrb[2].mxu0  ;;  %v6896_v53 = vpop.f32.mrb[2].mxu1  ;;  %4046 = vmatprep.mubr.bf16.mxu0 %v905_v48  ;;  %4374 = vmatprep.mubr.bf16.mxu1 %v905_v48  ;;  %v5925_v48 = vld [vmem:[#allocation8 + $0x38c] ss:$16 sps:$4 sm:$0xff]  }
 0x1f8   :  { %v6898_v56 = vpop.f32.mrb[3].mxu0  ;;  %v6900_v57 = vpop.f32.mrb[3].mxu1  ;;  %4047 = vmatmul.mubr.bf16.vlgmr.msra.gmra.mrb[8].mxu0 %v904_v51  ;;  %4375 = vmatmul.mubr.bf16.vlgmr.msra.gmra.mrb[8].mxu1 %v904_v51  ;;  %v5928_v51 = vld [vmem:[#allocation8 + $0x3a4] ss:$16 sps:$4 sm:$0xff]  }
 0x1f9   :  { %4056 = vmatpush1.bf16.msra.mxu0 %v5848_v49  ;;  %4384 = vmatpush1.bf16.msra.mxu1 %v5851_v50  ;;  %v5920_v49 = vld [vmem:[#allocation8 + $0x380] ss:$16 sps:$4 sm:$0xff]   ;;  %v5923_v50 = vld [vmem:[#allocation8 + $0x388] ss:$16 sps:$4 sm:$0xff]  }
 0x1fa   :  { %4087 = vmatprep.mubr.bf16.mxu0 %v907_v55  ;;  %4415 = vmatprep.mubr.bf16.mxu1 %v907_v55  ;;  %v5929_v55 = vld [vmem:[#allocation8 + $0x3a8] ss:$16 sps:$4 sm:$0xff]  }
 0x1fb   :  { %v6902_v62 = vpop.f32.mrb[4].mxu0  ;;  %v6904_v63 = vpop.f32.mrb[4].mxu1  ;;  %4057 = vmatprep.subr.bf16.mxu0 %v5856_v54  ;;  %4385 = vmatprep.subr.bf16.mxu1 %v5859_v0  ;;  %v5931_v54 = vld [vmem:[#allocation8 + $0x3ac] ss:$16 sps:$4 sm:$0xff]   ;;  %v5926_v0 = vld [vmem:[#allocation8 + $0x3a0] ss:$16 sps:$4 sm:$0xff]  }
 0x1fc   :  { %v6906_v1 = vpop.f32.mrb[5].mxu0  ;;  %v6908_v2 = vpop.f32.mrb[5].mxu1 }
 0x1fd   :  { %4058 = vmatpush1.bf16.msra.mxu0 %v5854_v58  ;;  %4386 = vmatpush1.bf16.msra.mxu1 %v5857_v59  ;;  %v5934_v58 = vld [vmem:[#allocation8 + $0x3c4] ss:$16 sps:$4 sm:$0xff]   ;;  %v5937_v59 = vld [vmem:[#allocation8 + $0x3cc] ss:$16 sps:$4 sm:$0xff]  }
 0x1fe   :  { %4059 = vmatprep.subr.bf16.mxu0 %v5862_v60  ;;  %4387 = vmatprep.subr.bf16.mxu1 %v5865_v61  ;;  %v5932_v60 = vld [vmem:[#allocation8 + $0x3c0] ss:$16 sps:$4 sm:$0xff]   ;;  %v5935_v61 = vld [vmem:[#allocation8 + $0x3c8] ss:$16 sps:$4 sm:$0xff]  }
 0x1ff   :  { %v6910_v7 = vpop.f32.mrb[6].mxu0  ;;  %v6912_v9 = vpop.f32.mrb[6].mxu1 }
 0x200   :  { %v6914_v10 = vpop.f32.mrb[7].mxu0  ;;  %v6916_v11 = vpop.f32.mrb[7].mxu1 }
 0x201   :  { %4060 = vmatpush1.bf16.msra.mxu0 %v5860_v3  ;;  %4388 = vmatpush1.bf16.msra.mxu1 %v5863_v4  ;;  %v5940_v3 = vld [vmem:[#allocation8 + $0x3e4] ss:$16 sps:$4 sm:$0xff]   ;;  %v5943_v4 = vld [vmem:[#allocation8 + $0x3ec] ss:$16 sps:$4 sm:$0xff]  }
 0x202   :  { %4061 = vmatprep.subr.bf16.mxu0 %v5868_v5  ;;  %4389 = vmatprep.subr.bf16.mxu1 %v5871_v6  ;;  %v5938_v5 = vld [vmem:[#allocation8 + $0x3e0] ss:$16 sps:$4 sm:$0xff]   ;;  %v5941_v6 = vld [vmem:[#allocation8 + $0x3e8] ss:$16 sps:$4 sm:$0xff]  }
 0x205   :  { %4062 = vmatpush1.bf16.msra.mxu0 %v5866_v12  ;;  %4390 = vmatpush1.bf16.msra.mxu1 %v5869_v13  ;;  %v5946_v12 = vld [vmem:[#allocation8 + $0x404] ss:$16 sps:$4 sm:$0xff]   ;;  %v5949_v13 = vld [vmem:[#allocation8 + $0x40c] ss:$16 sps:$4 sm:$0xff]  }
 0x206   :  { %4063 = vmatprep.subr.bf16.mxu0 %v5874_v14  ;;  %4391 = vmatprep.subr.bf16.mxu1 %v5877_v15  ;;  %v5944_v14 = vld [vmem:[#allocation8 + $0x400] ss:$16 sps:$4 sm:$0xff]   ;;  %v906_v15 = vpack.c.bf16 %v6892_v45, %v6892_v45  ;;  %v5961_v45 = vld [vmem:[#allocation8 + $0x44c] ss:$16 sps:$4 sm:$0xff]  }
 0x209   :  { %4064 = vmatpush1.bf16.msra.mxu0 %v5872_v16  ;;  %4392 = vmatpush1.bf16.msra.mxu1 %v5875_v17  ;;  %v5947_v16 = vld [vmem:[#allocation8 + $0x408] ss:$16 sps:$4 sm:$0xff]   ;;  %v909_v17 = vpack.c.bf16 %v6898_v56, %v6898_v56  ;;  %v5964_v56 = vld [vmem:[#allocation8 + $0x464] ss:$16 sps:$4 sm:$0xff]  }
 0x20a   :  { %4065 = vmatprep.subr.bf16.mxu0 %v5880_v18  ;;  %4393 = vmatprep.subr.bf16.mxu1 %v5883_v19  ;;  %v5952_v18 = vld [vmem:[#allocation8 + $0x424] ss:$16 sps:$4 sm:$0xff]   ;;  %v5955_v19 = vld [vmem:[#allocation8 + $0x42c] ss:$16 sps:$4 sm:$0xff]  }
 0x20d   :  { %4066 = vmatpush1.bf16.msra.mxu0 %v5878_v20  ;;  %4394 = vmatpush1.bf16.msra.mxu1 %v5881_v21  ;;  %v5950_v20 = vld [vmem:[#allocation8 + $0x420] ss:$16 sps:$4 sm:$0xff]   ;;  %v5953_v21 = vld [vmem:[#allocation8 + $0x428] ss:$16 sps:$4 sm:$0xff]  }
 0x20e   :  { %4067 = vmatprep.subr.bf16.mxu0 %v5886_v22  ;;  %4395 = vmatprep.subr.bf16.mxu1 %v5889_v23  ;;  %v5958_v22 = vld [vmem:[#allocation8 + $0x444] ss:$16 sps:$4 sm:$0xff]   ;;  %v5956_v23 = vld [vmem:[#allocation8 + $0x440] ss:$16 sps:$4 sm:$0xff]  }
 0x211   :  { %4068 = vmatpush1.bf16.msra.mxu0 %v5884_v24  ;;  %4396 = vmatpush1.bf16.msra.mxu1 %v5887_v25  ;;  %v5959_v24 = vld [vmem:[#allocation8 + $0x448] ss:$16 sps:$4 sm:$0xff]   ;;  %v5967_v25 = vld [vmem:[#allocation8 + $0x46c] ss:$16 sps:$4 sm:$0xff]  }
 0x212   :  { %4069 = vmatprep.subr.bf16.mxu0 %v5892_v26  ;;  %4397 = vmatprep.subr.bf16.mxu1 %v5895_v27  ;;  %v5962_v26 = vld [vmem:[#allocation8 + $0x460] ss:$16 sps:$4 sm:$0xff]   ;;  %v5965_v27 = vld [vmem:[#allocation8 + $0x468] ss:$16 sps:$4 sm:$0xff]  }
 0x215   :  { %4070 = vmatpush1.bf16.msra.mxu0 %v5890_v28  ;;  %4398 = vmatpush1.bf16.msra.mxu1 %v5893_v29  ;;  %v5970_v28 = vld [vmem:[#allocation8 + $0x484] ss:$16 sps:$4 sm:$0xff]   ;;  %v5973_v29 = vld [vmem:[#allocation8 + $0x48c] ss:$16 sps:$4 sm:$0xff]  }
 0x216   :  { %4071 = vmatprep.subr.bf16.mxu0 %v5898_v30  ;;  %4399 = vmatprep.subr.bf16.mxu1 %v5901_v31  ;;  %v5968_v30 = vld [vmem:[#allocation8 + $0x480] ss:$16 sps:$4 sm:$0xff]   ;;  %v5971_v31 = vld [vmem:[#allocation8 + $0x488] ss:$16 sps:$4 sm:$0xff]  }
 0x219   :  { %4072 = vmatpush1.bf16.msra.mxu0 %v5896_v32  ;;  %4400 = vmatpush1.bf16.msra.mxu1 %v5899_v33  ;;  %v5976_v32 = vld [vmem:[#allocation8 + $0x4a4] ss:$16 sps:$4 sm:$0xff]   ;;  %v5979_v33 = vld [vmem:[#allocation8 + $0x4ac] ss:$16 sps:$4 sm:$0xff]  }
 0x21a   :  { %4073 = vmatprep.subr.bf16.mxu0 %v5904_v34  ;;  %4401 = vmatprep.subr.bf16.mxu1 %v5907_v35  ;;  %v5974_v34 = vld [vmem:[#allocation8 + $0x4a0] ss:$16 sps:$4 sm:$0xff]   ;;  %v5977_v35 = vld [vmem:[#allocation8 + $0x4a8] ss:$16 sps:$4 sm:$0xff]  }
 0x21d   :  { %4074 = vmatpush1.bf16.msra.mxu0 %v5902_v36  ;;  %4402 = vmatpush1.bf16.msra.mxu1 %v5905_v37  ;;  %v5982_v36 = vld [vmem:[#allocation8 + $0x4c4] ss:$16 sps:$4 sm:$0xff]   ;;  %v5985_v37 = vld [vmem:[#allocation8 + $0x4cc] ss:$16 sps:$4 sm:$0xff]  }
 0x21e   :  { %4075 = vmatprep.subr.bf16.mxu0 %v5910_v38  ;;  %4403 = vmatprep.subr.bf16.mxu1 %v5913_v39  ;;  %v5980_v38 = vld [vmem:[#allocation8 + $0x4c0] ss:$16 sps:$4 sm:$0xff]   ;;  %v5983_v39 = vld [vmem:[#allocation8 + $0x4c8] ss:$16 sps:$4 sm:$0xff]  }
 0x221   :  { %4076 = vmatpush1.bf16.msra.mxu0 %v5908_v40  ;;  %4404 = vmatpush1.bf16.msra.mxu1 %v5911_v41  ;;  %v5988_v40 = vld [vmem:[#allocation8 + $0x4e4] ss:$16 sps:$4 sm:$0xff]   ;;  %v5991_v41 = vld [vmem:[#allocation8 + $0x4ec] ss:$16 sps:$4 sm:$0xff]  }
 0x222   :  { %4077 = vmatprep.subr.bf16.mxu0 %v5916_v42  ;;  %4405 = vmatprep.subr.bf16.mxu1 %v5919_v43  ;;  %v5986_v42 = vld [vmem:[#allocation8 + $0x4e0] ss:$16 sps:$4 sm:$0xff]   ;;  %v5989_v43 = vld [vmem:[#allocation8 + $0x4e8] ss:$16 sps:$4 sm:$0xff]  }
 0x225   :  { %4078 = vmatpush1.bf16.msra.mxu0 %v5914_v44  ;;  %4406 = vmatpush1.bf16.msra.mxu1 %v5917_v46  ;;  %v5994_v44 = vld [vmem:[#allocation8 + $0x504] ss:$16 sps:$4 sm:$0xff]   ;;  %v5997_v46 = vld [vmem:[#allocation8 + $0x50c] ss:$16 sps:$4 sm:$0xff]  }
 0x226   :  { %4079 = vmatprep.subr.bf16.mxu0 %v5922_v47  ;;  %4407 = vmatprep.subr.bf16.mxu1 %v5925_v48  ;;  %v5992_v47 = vld [vmem:[#allocation8 + $0x500] ss:$16 sps:$4 sm:$0xff]   ;;  %v5995_v48 = vld [vmem:[#allocation8 + $0x508] ss:$16 sps:$4 sm:$0xff]  }
 0x229   :  { %4080 = vmatpush1.bf16.msra.mxu0 %v5920_v49  ;;  %4408 = vmatpush1.bf16.msra.mxu1 %v5923_v50  ;;  %v6000_v49 = vld [vmem:[#allocation8 + $0x524] ss:$16 sps:$4 sm:$0xff]   ;;  %v6003_v50 = vld [vmem:[#allocation8 + $0x52c] ss:$16 sps:$4 sm:$0xff]  }
 0x22a   :  { %4081 = vmatprep.subr.bf16.mxu0 %v5928_v51  ;;  %4409 = vmatprep.subr.bf16.mxu1 %v5931_v54  ;;  %v5998_v51 = vld [vmem:[#allocation8 + $0x520] ss:$16 sps:$4 sm:$0xff]   ;;  %v6001_v54 = vld [vmem:[#allocation8 + $0x528] ss:$16 sps:$4 sm:$0xff]  }
 0x22d   :  { %4082 = vmatpush1.bf16.msra.mxu0 %v5926_v0  ;;  %4410 = vmatpush1.bf16.msra.mxu1 %v5929_v55  ;;  %v6006_v0 = vld [vmem:[#allocation8 + $0x544] ss:$16 sps:$4 sm:$0xff]   ;;  %v6009_v55 = vld [vmem:[#allocation8 + $0x54c] ss:$16 sps:$4 sm:$0xff]  }
 0x22e   :  { %4083 = vmatprep.subr.bf16.mxu0 %v5934_v58  ;;  %4411 = vmatprep.subr.bf16.mxu1 %v5937_v59  ;;  %v6004_v58 = vld [vmem:[#allocation8 + $0x540] ss:$16 sps:$4 sm:$0xff]   ;;  %v6007_v59 = vld [vmem:[#allocation8 + $0x548] ss:$16 sps:$4 sm:$0xff]  }
 0x231   :  { %4084 = vmatpush1.bf16.msra.mxu0 %v5932_v60  ;;  %4412 = vmatpush1.bf16.msra.mxu1 %v5935_v61  ;;  %v6012_v60 = vld [vmem:[#allocation8 + $0x564] ss:$16 sps:$4 sm:$0xff]   ;;  %v6015_v61 = vld [vmem:[#allocation8 + $0x56c] ss:$16 sps:$4 sm:$0xff]  }
 0x232   :  { %4085 = vmatprep.subr.bf16.mxu0 %v5940_v3  ;;  %4413 = vmatprep.subr.bf16.mxu1 %v5943_v4  ;;  %v6010_v3 = vld [vmem:[#allocation8 + $0x560] ss:$16 sps:$4 sm:$0xff]   ;;  %v6013_v4 = vld [vmem:[#allocation8 + $0x568] ss:$16 sps:$4 sm:$0xff]  }
 0x235   :  { %4086 = vmatpush1.bf16.msra.mxu0 %v5938_v5  ;;  %4414 = vmatpush1.bf16.msra.mxu1 %v5941_v6  ;;  %v6018_v5 = vld [vmem:[#allocation8 + $0x584] ss:$16 sps:$4 sm:$0xff]   ;;  %v6021_v6 = vld [vmem:[#allocation8 + $0x58c] ss:$16 sps:$4 sm:$0xff]  }
 0x236   :  { %4096 = vmatprep.subr.bf16.mxu0 %v5946_v12  ;;  %4424 = vmatprep.subr.bf16.mxu1 %v5949_v13  ;;  %v6016_v12 = vld [vmem:[#allocation8 + $0x580] ss:$16 sps:$4 sm:$0xff]   ;;  %v6019_v13 = vld [vmem:[#allocation8 + $0x588] ss:$16 sps:$4 sm:$0xff]  }
 0x238   :  { %4088 = vmatmul.mubr.bf16.vlgmr.msra.gmra.mrb[8].mxu0 %v906_v15  ;;  %4416 = vmatmul.mubr.bf16.vlgmr.msra.gmra.mrb[8].mxu1 %v906_v15  ;;  %v6027_v15 = vld [vmem:[#allocation8 + $0x5ac] ss:$16 sps:$4 sm:$0xff]  }
 0x239   :  { %4097 = vmatpush1.bf16.msra.mxu0 %v5944_v14  ;;  %4128 = vmatprep.mubr.bf16.mxu0 %v909_v17  ;;  %v6024_v14 = vld [vmem:[#allocation8 + $0x5a4] ss:$16 sps:$4 sm:$0xff]  }
 0x23a   :  { %4425 = vmatpush1.bf16.msra.mxu1 %v5947_v16  ;;  %4456 = vmatprep.mubr.bf16.mxu1 %v909_v17  ;;  %v6022_v16 = vld [vmem:[#allocation8 + $0x5a0] ss:$16 sps:$4 sm:$0xff]   ;;  %v6025_v17 = vld [vmem:[#allocation8 + $0x5a8] ss:$16 sps:$4 sm:$0xff]  }
 0x23b   :  { %4098 = vmatprep.subr.bf16.mxu0 %v5952_v18  ;;  %4426 = vmatprep.subr.bf16.mxu1 %v5955_v19  ;;  %v6030_v18 = vld [vmem:[#allocation8 + $0x5c4] ss:$16 sps:$4 sm:$0xff]   ;;  %v6033_v19 = vld [vmem:[#allocation8 + $0x5cc] ss:$16 sps:$4 sm:$0xff]  }
 0x23d   :  { %4099 = vmatpush1.bf16.msra.mxu0 %v5950_v20  ;;  %v6028_v20 = vld [vmem:[#allocation8 + $0x5c0] ss:$16 sps:$4 sm:$0xff]  }
 0x23e   :  { %4427 = vmatpush1.bf16.msra.mxu1 %v5953_v21  ;;  %4100 = vmatprep.subr.bf16.mxu0 %v5958_v22  ;;  %v6031_v21 = vld [vmem:[#allocation8 + $0x5c8] ss:$16 sps:$4 sm:$0xff]   ;;  %v6036_v22 = vld [vmem:[#allocation8 + $0x5e4] ss:$16 sps:$4 sm:$0xff]  }
 0x23f   :  { %4428 = vmatprep.subr.bf16.mxu1 %v5961_v45  ;;  %v6039_v45 = vld [vmem:[#allocation8 + $0x5ec] ss:$16 sps:$4 sm:$0xff]  }
 0x241   :  { %4101 = vmatpush1.bf16.msra.mxu0 %v5956_v23  ;;  %v6034_v23 = vld [vmem:[#allocation8 + $0x5e0] ss:$16 sps:$4 sm:$0xff]  }
 0x242   :  { %4429 = vmatpush1.bf16.msra.mxu1 %v5959_v24  ;;  %4102 = vmatprep.subr.bf16.mxu0 %v5964_v56  ;;  %v6037_v24 = vld [vmem:[#allocation8 + $0x5e8] ss:$16 sps:$4 sm:$0xff]   ;;  %v6042_v56 = vld [vmem:[#allocation8 + $0x604] ss:$16 sps:$4 sm:$0xff]  }
 0x243   :  { %4430 = vmatprep.subr.bf16.mxu1 %v5967_v25  ;;  %v6045_v25 = vld [vmem:[#allocation8 + $0x60c] ss:$16 sps:$4 sm:$0xff]  }
 0x245   :  { %4103 = vmatpush1.bf16.msra.mxu0 %v5962_v26  ;;  %v6040_v26 = vld [vmem:[#allocation8 + $0x600] ss:$16 sps:$4 sm:$0xff]  }
 0x246   :  { %4431 = vmatpush1.bf16.msra.mxu1 %v5965_v27  ;;  %4104 = vmatprep.subr.bf16.mxu0 %v5970_v28  ;;  %v908_v27 = vpack.c.bf16 %v6894_v52, %v6894_v52  ;;  %v6043_v28 = vld [vmem:[#allocation8 + $0x608] ss:$16 sps:$4 sm:$0xff]   ;;  %v6057_v52 = vld [vmem:[#allocation8 + $0x64c] ss:$16 sps:$4 sm:$0xff]  }
 0x247   :  { %4432 = vmatprep.subr.bf16.mxu1 %v5973_v29  ;;  %v6048_v29 = vld [vmem:[#allocation8 + $0x624] ss:$16 sps:$4 sm:$0xff]  }
 0x249   :  { %4105 = vmatpush1.bf16.msra.mxu0 %v5968_v30  ;;  %v911_v30 = vpack.c.bf16 %v6900_v57, %v6900_v57  ;;  %v6063_v57 = vld [vmem:[#allocation8 + $0x66c] ss:$16 sps:$4 sm:$0xff]  }
 0x24a   :  { %4433 = vmatpush1.bf16.msra.mxu1 %v5971_v31  ;;  %4106 = vmatprep.subr.bf16.mxu0 %v5976_v32  ;;  %v6051_v31 = vld [vmem:[#allocation8 + $0x62c] ss:$16 sps:$4 sm:$0xff]   ;;  %v6046_v32 = vld [vmem:[#allocation8 + $0x620] ss:$16 sps:$4 sm:$0xff]  }
 0x24b   :  { %4434 = vmatprep.subr.bf16.mxu1 %v5979_v33  ;;  %v6049_v33 = vld [vmem:[#allocation8 + $0x628] ss:$16 sps:$4 sm:$0xff]  }
 0x24d   :  { %4107 = vmatpush1.bf16.msra.mxu0 %v5974_v34  ;;  %v6054_v34 = vld [vmem:[#allocation8 + $0x644] ss:$16 sps:$4 sm:$0xff]  }
 0x24e   :  { %4435 = vmatpush1.bf16.msra.mxu1 %v5977_v35  ;;  %4108 = vmatprep.subr.bf16.mxu0 %v5982_v36  ;;  %v6052_v35 = vld [vmem:[#allocation8 + $0x640] ss:$16 sps:$4 sm:$0xff]   ;;  %v6055_v36 = vld [vmem:[#allocation8 + $0x648] ss:$16 sps:$4 sm:$0xff]  }
 0x24f   :  { %4436 = vmatprep.subr.bf16.mxu1 %v5985_v37  ;;  %v6060_v37 = vld [vmem:[#allocation8 + $0x664] ss:$16 sps:$4 sm:$0xff]  }
 0x251   :  { %4109 = vmatpush1.bf16.msra.mxu0 %v5980_v38  ;;  %v6058_v38 = vld [vmem:[#allocation8 + $0x660] ss:$16 sps:$4 sm:$0xff]  }
 0x252   :  { %4437 = vmatpush1.bf16.msra.mxu1 %v5983_v39  ;;  %4110 = vmatprep.subr.bf16.mxu0 %v5988_v40  ;;  %v6061_v39 = vld [vmem:[#allocation8 + $0x668] ss:$16 sps:$4 sm:$0xff]   ;;  %v6066_v40 = vld [vmem:[#allocation8 + $0x684] ss:$16 sps:$4 sm:$0xff]  }
 0x253   :  { %4438 = vmatprep.subr.bf16.mxu1 %v5991_v41  ;;  %v6069_v41 = vld [vmem:[#allocation8 + $0x68c] ss:$16 sps:$4 sm:$0xff]  }
 0x255   :  { %4111 = vmatpush1.bf16.msra.mxu0 %v5986_v42  ;;  %v6064_v42 = vld [vmem:[#allocation8 + $0x680] ss:$16 sps:$4 sm:$0xff]  }
 0x256   :  { %4439 = vmatpush1.bf16.msra.mxu1 %v5989_v43  ;;  %4112 = vmatprep.subr.bf16.mxu0 %v5994_v44  ;;  %v6067_v43 = vld [vmem:[#allocation8 + $0x688] ss:$16 sps:$4 sm:$0xff]   ;;  %v6072_v44 = vld [vmem:[#allocation8 + $0x6a4] ss:$16 sps:$4 sm:$0xff]  }
 0x257   :  { %4440 = vmatprep.subr.bf16.mxu1 %v5997_v46  ;;  %v6075_v46 = vld [vmem:[#allocation8 + $0x6ac] ss:$16 sps:$4 sm:$0xff]  }
 0x259   :  { %4113 = vmatpush1.bf16.msra.mxu0 %v5992_v47  ;;  %v6070_v47 = vld [vmem:[#allocation8 + $0x6a0] ss:$16 sps:$4 sm:$0xff]  }
 0x25a   :  { %4441 = vmatpush1.bf16.msra.mxu1 %v5995_v48  ;;  %4114 = vmatprep.subr.bf16.mxu0 %v6000_v49  ;;  %v6073_v48 = vld [vmem:[#allocation8 + $0x6a8] ss:$16 sps:$4 sm:$0xff]   ;;  %v6078_v49 = vld [vmem:[#allocation8 + $0x6c4] ss:$16 sps:$4 sm:$0xff]  }
 0x25b   :  { %4442 = vmatprep.subr.bf16.mxu1 %v6003_v50  ;;  %v6081_v50 = vld [vmem:[#allocation8 + $0x6cc] ss:$16 sps:$4 sm:$0xff]  }
 0x25d   :  { %4115 = vmatpush1.bf16.msra.mxu0 %v5998_v51  ;;  %v6076_v51 = vld [vmem:[#allocation8 + $0x6c0] ss:$16 sps:$4 sm:$0xff]  }
 0x25e   :  { %4443 = vmatpush1.bf16.msra.mxu1 %v6001_v54  ;;  %4116 = vmatprep.subr.bf16.mxu0 %v6006_v0  ;;  %v6079_v54 = vld [vmem:[#allocation8 + $0x6c8] ss:$16 sps:$4 sm:$0xff]   ;;  %v6084_v0 = vld [vmem:[#allocation8 + $0x6e4] ss:$16 sps:$4 sm:$0xff]  }
 0x25f   :  { %4444 = vmatprep.subr.bf16.mxu1 %v6009_v55  ;;  %v6087_v55 = vld [vmem:[#allocation8 + $0x6ec] ss:$16 sps:$4 sm:$0xff]  }
 0x261   :  { %4117 = vmatpush1.bf16.msra.mxu0 %v6004_v58  ;;  %v6082_v58 = vld [vmem:[#allocation8 + $0x6e0] ss:$16 sps:$4 sm:$0xff]  }
 0x262   :  { %4445 = vmatpush1.bf16.msra.mxu1 %v6007_v59  ;;  %4118 = vmatprep.subr.bf16.mxu0 %v6012_v60  ;;  %v6085_v59 = vld [vmem:[#allocation8 + $0x6e8] ss:$16 sps:$4 sm:$0xff]   ;;  %v6090_v60 = vld [vmem:[#allocation8 + $0x704] ss:$16 sps:$4 sm:$0xff]  }
 0x263   :  { %4446 = vmatprep.subr.bf16.mxu1 %v6015_v61  ;;  %v6093_v61 = vld [vmem:[#allocation8 + $0x70c] ss:$16 sps:$4 sm:$0xff]  }
 0x265   :  { %4119 = vmatpush1.bf16.msra.mxu0 %v6010_v3  ;;  %v6088_v3 = vld [vmem:[#allocation8 + $0x700] ss:$16 sps:$4 sm:$0xff]  }
 0x266   :  { %4447 = vmatpush1.bf16.msra.mxu1 %v6013_v4  ;;  %4120 = vmatprep.subr.bf16.mxu0 %v6018_v5  ;;  %v6091_v4 = vld [vmem:[#allocation8 + $0x708] ss:$16 sps:$4 sm:$0xff]   ;;  %v6096_v5 = vld [vmem:[#allocation8 + $0x724] ss:$16 sps:$4 sm:$0xff]  }
 0x267   :  { %4448 = vmatprep.subr.bf16.mxu1 %v6021_v6  ;;  %v6099_v6 = vld [vmem:[#allocation8 + $0x72c] ss:$16 sps:$4 sm:$0xff]  }
 0x269   :  { %4121 = vmatpush1.bf16.msra.mxu0 %v6016_v12  ;;  %v6094_v12 = vld [vmem:[#allocation8 + $0x720] ss:$16 sps:$4 sm:$0xff]  }
 0x26a   :  { %4449 = vmatpush1.bf16.msra.mxu1 %v6019_v13  ;;  %4122 = vmatprep.subr.bf16.mxu0 %v6024_v14  ;;  %v6097_v13 = vld [vmem:[#allocation8 + $0x728] ss:$16 sps:$4 sm:$0xff]   ;;  %v6102_v14 = vld [vmem:[#allocation8 + $0x744] ss:$16 sps:$4 sm:$0xff]  }
 0x26b   :  { %4450 = vmatprep.subr.bf16.mxu1 %v6027_v15  ;;  %v6105_v15 = vld [vmem:[#allocation8 + $0x74c] ss:$16 sps:$4 sm:$0xff]  }
 0x26d   :  { %4123 = vmatpush1.bf16.msra.mxu0 %v6022_v16  ;;  %v6100_v16 = vld [vmem:[#allocation8 + $0x740] ss:$16 sps:$4 sm:$0xff]  }
 0x26e   :  { %4451 = vmatpush1.bf16.msra.mxu1 %v6025_v17  ;;  %4124 = vmatprep.subr.bf16.mxu0 %v6030_v18  ;;  %v6103_v17 = vld [vmem:[#allocation8 + $0x748] ss:$16 sps:$4 sm:$0xff]   ;;  %v6108_v18 = vld [vmem:[#allocation8 + $0x764] ss:$16 sps:$4 sm:$0xff]  }
 0x26f   :  { %4452 = vmatprep.subr.bf16.mxu1 %v6033_v19  ;;  %v6111_v19 = vld [vmem:[#allocation8 + $0x76c] ss:$16 sps:$4 sm:$0xff]  }
 0x271   :  { %4125 = vmatpush1.bf16.msra.mxu0 %v6028_v20  ;;  %v6106_v20 = vld [vmem:[#allocation8 + $0x760] ss:$16 sps:$4 sm:$0xff]  }
 0x272   :  { %4453 = vmatpush1.bf16.msra.mxu1 %v6031_v21  ;;  %4126 = vmatprep.subr.bf16.mxu0 %v6036_v22  ;;  %v6109_v21 = vld [vmem:[#allocation8 + $0x768] ss:$16 sps:$4 sm:$0xff]   ;;  %v6114_v22 = vld [vmem:[#allocation8 + $0x784] ss:$16 sps:$4 sm:$0xff]  }
 0x273   :  { %4454 = vmatprep.subr.bf16.mxu1 %v6039_v45  ;;  %v6117_v45 = vld [vmem:[#allocation8 + $0x78c] ss:$16 sps:$4 sm:$0xff]  }
 0x275   :  { %4127 = vmatpush1.bf16.msra.mxu0 %v6034_v23  ;;  %v6112_v23 = vld [vmem:[#allocation8 + $0x780] ss:$16 sps:$4 sm:$0xff]  }
 0x276   :  { %4455 = vmatpush1.bf16.msra.mxu1 %v6037_v24  ;;  %4137 = vmatprep.subr.bf16.mxu0 %v6042_v56  ;;  %v6115_v24 = vld [vmem:[#allocation8 + $0x788] ss:$16 sps:$4 sm:$0xff]   ;;  %v6120_v56 = vld [vmem:[#allocation8 + $0x7a4] ss:$16 sps:$4 sm:$0xff]  }
 0x277   :  { %4465 = vmatprep.subr.bf16.mxu1 %v6045_v25  ;;  %v6123_v25 = vld [vmem:[#allocation8 + $0x7ac] ss:$16 sps:$4 sm:$0xff]  }
 0x278   :  { %4129 = vmatmul.mubr.bf16.vlgmr.msra.gmra.mrb[8].mxu0 %v908_v27 }
 0x279   :  { %4457 = vmatmul.mubr.bf16.vlgmr.msra.gmra.mrb[8].mxu1 %v908_v27  ;;  %4138 = vmatpush1.bf16.msra.mxu0 %v6040_v26  ;;  %v6118_v26 = vld [vmem:[#allocation8 + $0x7a0] ss:$16 sps:$4 sm:$0xff]   ;;  %v6121_v27 = vld [vmem:[#allocation8 + $0x7a8] ss:$16 sps:$4 sm:$0xff]  }
 0x27a   :  { %4169 = vmatprep.mubr.bf16.mxu0 %v911_v30  ;;  %4466 = vmatpush1.bf16.msra.mxu1 %v6043_v28  ;;  %v6126_v28 = vld [vmem:[#allocation8 + $0x7c4] ss:$16 sps:$4 sm:$0xff]  }
 0x27b   :  { %4497 = vmatprep.mubr.bf16.mxu1 %v911_v30  ;;  %4139 = vmatprep.subr.bf16.mxu0 %v6048_v29  ;;  %v6129_v29 = vld [vmem:[#allocation8 + $0x7cc] ss:$16 sps:$4 sm:$0xff]   ;;  %v6124_v30 = vld [vmem:[#allocation8 + $0x7c0] ss:$16 sps:$4 sm:$0xff]  }
 0x27c   :  { %4467 = vmatprep.subr.bf16.mxu1 %v6051_v31  ;;  %v6127_v31 = vld [vmem:[#allocation8 + $0x7c8] ss:$16 sps:$4 sm:$0xff]  }
 0x27d   :  { %4140 = vmatpush1.bf16.msra.mxu0 %v6046_v32  ;;  %v6132_v32 = vld [vmem:[#allocation8 + $0x7e4] ss:$16 sps:$4 sm:$0xff]  }
 0x27e   :  { %4468 = vmatpush1.bf16.msra.mxu1 %v6049_v33  ;;  %4141 = vmatprep.subr.bf16.mxu0 %v6054_v34  ;;  %v6135_v33 = vld [vmem:[#allocation8 + $0x7ec] ss:$16 sps:$4 sm:$0xff]   ;;  %v6130_v34 = vld [vmem:[#allocation8 + $0x7e0] ss:$16 sps:$4 sm:$0xff]  }
 0x27f   :  { %4469 = vmatprep.subr.bf16.mxu1 %v6057_v52  ;;  %v6133_v52 = vld [vmem:[#allocation8 + $0x7e8] ss:$16 sps:$4 sm:$0xff]  }
 0x281   :  { %4142 = vmatpush1.bf16.msra.mxu0 %v6052_v35  ;;  %v6138_v35 = vld [vmem:[#allocation8 + $0x804] ss:$16 sps:$4 sm:$0xff]  }
 0x282   :  { %4470 = vmatpush1.bf16.msra.mxu1 %v6055_v36  ;;  %4143 = vmatprep.subr.bf16.mxu0 %v6060_v37  ;;  %v6141_v36 = vld [vmem:[#allocation8 + $0x80c] ss:$16 sps:$4 sm:$0xff]   ;;  %v6136_v37 = vld [vmem:[#allocation8 + $0x800] ss:$16 sps:$4 sm:$0xff]  }
 0x283   :  { %4471 = vmatprep.subr.bf16.mxu1 %v6063_v57  ;;  %v910_v57 = vpack.c.bf16 %v6896_v53, %v6896_v53  ;;  %v6153_v53 = vld [vmem:[#allocation8 + $0x84c] ss:$16 sps:$4 sm:$0xff]  }
 0x285   :  { %4144 = vmatpush1.bf16.msra.mxu0 %v6058_v38  ;;  %v6139_v38 = vld [vmem:[#allocation8 + $0x808] ss:$16 sps:$4 sm:$0xff]  }
 0x286   :  { %4472 = vmatpush1.bf16.msra.mxu1 %v6061_v39  ;;  %4145 = vmatprep.subr.bf16.mxu0 %v6066_v40  ;;  %v6144_v39 = vld [vmem:[#allocation8 + $0x824] ss:$16 sps:$4 sm:$0xff]   ;;  %v913_v40 = vpack.c.bf16 %v6906_v1, %v6906_v1  ;;  %v6159_v1 = vld [vmem:[#allocation8 + $0x86c] ss:$16 sps:$4 sm:$0xff]  }
 0x287   :  { %4473 = vmatprep.subr.bf16.mxu1 %v6069_v41  ;;  %v6147_v41 = vld [vmem:[#allocation8 + $0x82c] ss:$16 sps:$4 sm:$0xff]  }
 0x289   :  { %4146 = vmatpush1.bf16.msra.mxu0 %v6064_v42  ;;  %v6142_v42 = vld [vmem:[#allocation8 + $0x820] ss:$16 sps:$4 sm:$0xff]  }
 0x28a   :  { %4474 = vmatpush1.bf16.msra.mxu1 %v6067_v43  ;;  %4147 = vmatprep.subr.bf16.mxu0 %v6072_v44  ;;  %v6145_v43 = vld [vmem:[#allocation8 + $0x828] ss:$16 sps:$4 sm:$0xff]   ;;  %v6150_v44 = vld [vmem:[#allocation8 + $0x844] ss:$16 sps:$4 sm:$0xff]  }
 0x28b   :  { %4475 = vmatprep.subr.bf16.mxu1 %v6075_v46  ;;  %v6148_v46 = vld [vmem:[#allocation8 + $0x840] ss:$16 sps:$4 sm:$0xff]  }
 0x28d   :  { %4148 = vmatpush1.bf16.msra.mxu0 %v6070_v47  ;;  %v6151_v47 = vld [vmem:[#allocation8 + $0x848] ss:$16 sps:$4 sm:$0xff]  }
 0x28e   :  { %4476 = vmatpush1.bf16.msra.mxu1 %v6073_v48  ;;  %4149 = vmatprep.subr.bf16.mxu0 %v6078_v49  ;;  %v6156_v48 = vld [vmem:[#allocation8 + $0x864] ss:$16 sps:$4 sm:$0xff]   ;;  %v6154_v49 = vld [vmem:[#allocation8 + $0x860] ss:$16 sps:$4 sm:$0xff]  }
 0x28f   :  { %4477 = vmatprep.subr.bf16.mxu1 %v6081_v50  ;;  %v6157_v50 = vld [vmem:[#allocation8 + $0x868] ss:$16 sps:$4 sm:$0xff]  }
 0x291   :  { %4150 = vmatpush1.bf16.msra.mxu0 %v6076_v51  ;;  %v6162_v51 = vld [vmem:[#allocation8 + $0x884] ss:$16 sps:$4 sm:$0xff]  }
 0x292   :  { %4478 = vmatpush1.bf16.msra.mxu1 %v6079_v54  ;;  %4151 = vmatprep.subr.bf16.mxu0 %v6084_v0  ;;  %v6165_v54 = vld [vmem:[#allocation8 + $0x88c] ss:$16 sps:$4 sm:$0xff]   ;;  %v6160_v0 = vld [vmem:[#allocation8 + $0x880] ss:$16 sps:$4 sm:$0xff]  }
 0x293   :  { %4479 = vmatprep.subr.bf16.mxu1 %v6087_v55  ;;  %v6163_v55 = vld [vmem:[#allocation8 + $0x888] ss:$16 sps:$4 sm:$0xff]  }
 0x295   :  { %4152 = vmatpush1.bf16.msra.mxu0 %v6082_v58  ;;  %v6168_v58 = vld [vmem:[#allocation8 + $0x8a4] ss:$16 sps:$4 sm:$0xff]  }
 0x296   :  { %4480 = vmatpush1.bf16.msra.mxu1 %v6085_v59  ;;  %4153 = vmatprep.subr.bf16.mxu0 %v6090_v60  ;;  %v6171_v59 = vld [vmem:[#allocation8 + $0x8ac] ss:$16 sps:$4 sm:$0xff]   ;;  %v6166_v60 = vld [vmem:[#allocation8 + $0x8a0] ss:$16 sps:$4 sm:$0xff]  }
 0x297   :  { %4481 = vmatprep.subr.bf16.mxu1 %v6093_v61  ;;  %v6169_v61 = vld [vmem:[#allocation8 + $0x8a8] ss:$16 sps:$4 sm:$0xff]  }
 0x299   :  { %4154 = vmatpush1.bf16.msra.mxu0 %v6088_v3  ;;  %v6174_v3 = vld [vmem:[#allocation8 + $0x8c4] ss:$16 sps:$4 sm:$0xff]  }
 0x29a   :  { %4482 = vmatpush1.bf16.msra.mxu1 %v6091_v4  ;;  %4155 = vmatprep.subr.bf16.mxu0 %v6096_v5  ;;  %v6177_v4 = vld [vmem:[#allocation8 + $0x8cc] ss:$16 sps:$4 sm:$0xff]   ;;  %v6172_v5 = vld [vmem:[#allocation8 + $0x8c0] ss:$16 sps:$4 sm:$0xff]  }
 0x29b   :  { %4483 = vmatprep.subr.bf16.mxu1 %v6099_v6  ;;  %v6175_v6 = vld [vmem:[#allocation8 + $0x8c8] ss:$16 sps:$4 sm:$0xff]  }
 0x29d   :  { %4156 = vmatpush1.bf16.msra.mxu0 %v6094_v12  ;;  %v6180_v12 = vld [vmem:[#allocation8 + $0x8e4] ss:$16 sps:$4 sm:$0xff]  }
 0x29e   :  { %4484 = vmatpush1.bf16.msra.mxu1 %v6097_v13  ;;  %4157 = vmatprep.subr.bf16.mxu0 %v6102_v14  ;;  %v6183_v13 = vld [vmem:[#allocation8 + $0x8ec] ss:$16 sps:$4 sm:$0xff]   ;;  %v6178_v14 = vld [vmem:[#allocation8 + $0x8e0] ss:$16 sps:$4 sm:$0xff]  }
 0x29f   :  { %4485 = vmatprep.subr.bf16.mxu1 %v6105_v15  ;;  %v6181_v15 = vld [vmem:[#allocation8 + $0x8e8] ss:$16 sps:$4 sm:$0xff]  }
 0x2a1   :  { %4158 = vmatpush1.bf16.msra.mxu0 %v6100_v16  ;;  %v6186_v16 = vld [vmem:[#allocation8 + $0x904] ss:$16 sps:$4 sm:$0xff]  }
 0x2a2   :  { %4486 = vmatpush1.bf16.msra.mxu1 %v6103_v17  ;;  %4159 = vmatprep.subr.bf16.mxu0 %v6108_v18  ;;  %v6189_v17 = vld [vmem:[#allocation8 + $0x90c] ss:$16 sps:$4 sm:$0xff]   ;;  %v6184_v18 = vld [vmem:[#allocation8 + $0x900] ss:$16 sps:$4 sm:$0xff]  }
 0x2a3   :  { %4487 = vmatprep.subr.bf16.mxu1 %v6111_v19  ;;  %v6187_v19 = vld [vmem:[#allocation8 + $0x908] ss:$16 sps:$4 sm:$0xff]  }
 0x2a5   :  { %4160 = vmatpush1.bf16.msra.mxu0 %v6106_v20  ;;  %v6192_v20 = vld [vmem:[#allocation8 + $0x924] ss:$16 sps:$4 sm:$0xff]  }
 0x2a6   :  { %4488 = vmatpush1.bf16.msra.mxu1 %v6109_v21  ;;  %4161 = vmatprep.subr.bf16.mxu0 %v6114_v22  ;;  %v6195_v21 = vld [vmem:[#allocation8 + $0x92c] ss:$16 sps:$4 sm:$0xff]   ;;  %v6190_v22 = vld [vmem:[#allocation8 + $0x920] ss:$16 sps:$4 sm:$0xff]  }
 0x2a7   :  { %4489 = vmatprep.subr.bf16.mxu1 %v6117_v45  ;;  %v6193_v45 = vld [vmem:[#allocation8 + $0x928] ss:$16 sps:$4 sm:$0xff]  }
 0x2a9   :  { %4162 = vmatpush1.bf16.msra.mxu0 %v6112_v23  ;;  %v6198_v23 = vld [vmem:[#allocation8 + $0x944] ss:$16 sps:$4 sm:$0xff]  }
 0x2aa   :  { %4490 = vmatpush1.bf16.msra.mxu1 %v6115_v24  ;;  %4163 = vmatprep.subr.bf16.mxu0 %v6120_v56  ;;  %v6201_v24 = vld [vmem:[#allocation8 + $0x94c] ss:$16 sps:$4 sm:$0xff]   ;;  %v6196_v56 = vld [vmem:[#allocation8 + $0x940] ss:$16 sps:$4 sm:$0xff]  }
 0x2ab   :  { %4491 = vmatprep.subr.bf16.mxu1 %v6123_v25  ;;  %v6199_v25 = vld [vmem:[#allocation8 + $0x948] ss:$16 sps:$4 sm:$0xff]  }
 0x2ad   :  { %4164 = vmatpush1.bf16.msra.mxu0 %v6118_v26  ;;  %v6204_v26 = vld [vmem:[#allocation8 + $0x964] ss:$16 sps:$4 sm:$0xff]  }
 0x2ae   :  { %4492 = vmatpush1.bf16.msra.mxu1 %v6121_v27  ;;  %4165 = vmatprep.subr.bf16.mxu0 %v6126_v28  ;;  %v6207_v27 = vld [vmem:[#allocation8 + $0x96c] ss:$16 sps:$4 sm:$0xff]   ;;  %v6202_v28 = vld [vmem:[#allocation8 + $0x960] ss:$16 sps:$4 sm:$0xff]  }
 0x2af   :  { %4493 = vmatprep.subr.bf16.mxu1 %v6129_v29  ;;  %v6205_v29 = vld [vmem:[#allocation8 + $0x968] ss:$16 sps:$4 sm:$0xff]  }
 0x2b1   :  { %4166 = vmatpush1.bf16.msra.mxu0 %v6124_v30  ;;  %v6210_v30 = vld [vmem:[#allocation8 + $0x984] ss:$16 sps:$4 sm:$0xff]  }
 0x2b2   :  { %4494 = vmatpush1.bf16.msra.mxu1 %v6127_v31  ;;  %4167 = vmatprep.subr.bf16.mxu0 %v6132_v32  ;;  %v6213_v31 = vld [vmem:[#allocation8 + $0x98c] ss:$16 sps:$4 sm:$0xff]   ;;  %v6208_v32 = vld [vmem:[#allocation8 + $0x980] ss:$16 sps:$4 sm:$0xff]  }
 0x2b3   :  { %4495 = vmatprep.subr.bf16.mxu1 %v6135_v33  ;;  %v6211_v33 = vld [vmem:[#allocation8 + $0x988] ss:$16 sps:$4 sm:$0xff]  }
 0x2b5   :  { %4168 = vmatpush1.bf16.msra.mxu0 %v6130_v34  ;;  %v6216_v34 = vld [vmem:[#allocation8 + $0x9a4] ss:$16 sps:$4 sm:$0xff]  }
 0x2b6   :  { %4496 = vmatpush1.bf16.msra.mxu1 %v6133_v52  ;;  %4178 = vmatprep.subr.bf16.mxu0 %v6138_v35  ;;  %v6219_v52 = vld [vmem:[#allocation8 + $0x9ac] ss:$16 sps:$4 sm:$0xff]   ;;  %v6214_v35 = vld [vmem:[#allocation8 + $0x9a0] ss:$16 sps:$4 sm:$0xff]  }
 0x2b7   :  { %4506 = vmatprep.subr.bf16.mxu1 %v6141_v36  ;;  %v6217_v36 = vld [vmem:[#allocation8 + $0x9a8] ss:$16 sps:$4 sm:$0xff]  }
 0x2b8   :  { %4170 = vmatmul.mubr.bf16.vlgmr.msra.gmra.mrb[8].mxu0 %v910_v57 }
 0x2b9   :  { %4498 = vmatmul.mubr.bf16.vlgmr.msra.gmra.mrb[8].mxu1 %v910_v57  ;;  %4179 = vmatpush1.bf16.msra.mxu0 %v6136_v37  ;;  %v6222_v37 = vld [vmem:[#allocation8 + $0x9c4] ss:$16 sps:$4 sm:$0xff]   ;;  %v6225_v57 = vld [vmem:[#allocation8 + $0x9cc] ss:$16 sps:$4 sm:$0xff]  }
 0x2ba   :  { %4210 = vmatprep.mubr.bf16.mxu0 %v913_v40  ;;  %4507 = vmatpush1.bf16.msra.mxu1 %v6139_v38  ;;  %v6220_v38 = vld [vmem:[#allocation8 + $0x9c0] ss:$16 sps:$4 sm:$0xff]  }
 0x2bb   :  { %4538 = vmatprep.mubr.bf16.mxu1 %v913_v40  ;;  %4180 = vmatprep.subr.bf16.mxu0 %v6144_v39  ;;  %v6223_v39 = vld [vmem:[#allocation8 + $0x9c8] ss:$16 sps:$4 sm:$0xff]   ;;  %v6228_v40 = vld [vmem:[#allocation8 + $0x9e4] ss:$16 sps:$4 sm:$0xff]  }
 0x2bc   :  { %4508 = vmatprep.subr.bf16.mxu1 %v6147_v41  ;;  %v6231_v41 = vld [vmem:[#allocation8 + $0x9ec] ss:$16 sps:$4 sm:$0xff]  }
 0x2bd   :  { %4181 = vmatpush1.bf16.msra.mxu0 %v6142_v42  ;;  %v6226_v42 = vld [vmem:[#allocation8 + $0x9e0] ss:$16 sps:$4 sm:$0xff]  }
 0x2be   :  { %4509 = vmatpush1.bf16.msra.mxu1 %v6145_v43  ;;  %4182 = vmatprep.subr.bf16.mxu0 %v6150_v44  ;;  %v6229_v43 = vld [vmem:[#allocation8 + $0x9e8] ss:$16 sps:$4 sm:$0xff]   ;;  %v6234_v44 = vld [vmem:[#allocation8 + $0xa04] ss:$16 sps:$4 sm:$0xff]  }
 0x2bf   :  { %4510 = vmatprep.subr.bf16.mxu1 %v6153_v53  ;;  %v6237_v53 = vld [vmem:[#allocation8 + $0xa0c] ss:$16 sps:$4 sm:$0xff]  }
 0x2c1   :  { %4183 = vmatpush1.bf16.msra.mxu0 %v6148_v46  ;;  %v6232_v46 = vld [vmem:[#allocation8 + $0xa00] ss:$16 sps:$4 sm:$0xff]  }
 0x2c2   :  { %4511 = vmatpush1.bf16.msra.mxu1 %v6151_v47  ;;  %4184 = vmatprep.subr.bf16.mxu0 %v6156_v48  ;;  %v912_v47 = vpack.c.bf16 %v6902_v62, %v6902_v62  ;;  %v6235_v48 = vld [vmem:[#allocation8 + $0xa08] ss:$16 sps:$4 sm:$0xff]   ;;  %v6249_v62 = vld [vmem:[#allocation8 + $0xa4c] ss:$16 sps:$4 sm:$0xff]  }
 0x2c3   :  { %4512 = vmatprep.subr.bf16.mxu1 %v6159_v1  ;;  %v6240_v1 = vld [vmem:[#allocation8 + $0xa24] ss:$16 sps:$4 sm:$0xff]  }
 0x2c5   :  { %4185 = vmatpush1.bf16.msra.mxu0 %v6154_v49  ;;  %v915_v49 = vpack.c.bf16 %v6908_v2, %v6908_v2  ;;  %v6255_v2 = vld [vmem:[#allocation8 + $0xa6c] ss:$16 sps:$4 sm:$0xff]  }
 0x2c6   :  { %4513 = vmatpush1.bf16.msra.mxu1 %v6157_v50  ;;  %4186 = vmatprep.subr.bf16.mxu0 %v6162_v51  ;;  %v6243_v50 = vld [vmem:[#allocation8 + $0xa2c] ss:$16 sps:$4 sm:$0xff]   ;;  %v6238_v51 = vld [vmem:[#allocation8 + $0xa20] ss:$16 sps:$4 sm:$0xff]  }
 0x2c7   :  { %4514 = vmatprep.subr.bf16.mxu1 %v6165_v54  ;;  %v6241_v54 = vld [vmem:[#allocation8 + $0xa28] ss:$16 sps:$4 sm:$0xff]  }
 0x2c9   :  { %4187 = vmatpush1.bf16.msra.mxu0 %v6160_v0  ;;  %v6246_v0 = vld [vmem:[#allocation8 + $0xa44] ss:$16 sps:$4 sm:$0xff]  }
 0x2ca   :  { %4515 = vmatpush1.bf16.msra.mxu1 %v6163_v55  ;;  %4188 = vmatprep.subr.bf16.mxu0 %v6168_v58  ;;  %v6244_v55 = vld [vmem:[#allocation8 + $0xa40] ss:$16 sps:$4 sm:$0xff]   ;;  %v6247_v58 = vld [vmem:[#allocation8 + $0xa48] ss:$16 sps:$4 sm:$0xff]  }
 0x2cb   :  { %4516 = vmatprep.subr.bf16.mxu1 %v6171_v59  ;;  %v6252_v59 = vld [vmem:[#allocation8 + $0xa64] ss:$16 sps:$4 sm:$0xff]  }
 0x2cd   :  { %4189 = vmatpush1.bf16.msra.mxu0 %v6166_v60  ;;  %v6250_v60 = vld [vmem:[#allocation8 + $0xa60] ss:$16 sps:$4 sm:$0xff]  }
 0x2ce   :  { %4517 = vmatpush1.bf16.msra.mxu1 %v6169_v61  ;;  %4190 = vmatprep.subr.bf16.mxu0 %v6174_v3  ;;  %v6253_v61 = vld [vmem:[#allocation8 + $0xa68] ss:$16 sps:$4 sm:$0xff]   ;;  %v6258_v3 = vld [vmem:[#allocation8 + $0xa84] ss:$16 sps:$4 sm:$0xff]  }
 0x2cf   :  { %4518 = vmatprep.subr.bf16.mxu1 %v6177_v4  ;;  %v6261_v4 = vld [vmem:[#allocation8 + $0xa8c] ss:$16 sps:$4 sm:$0xff]  }
 0x2d1   :  { %4191 = vmatpush1.bf16.msra.mxu0 %v6172_v5  ;;  %v6256_v5 = vld [vmem:[#allocation8 + $0xa80] ss:$16 sps:$4 sm:$0xff]  }
 0x2d2   :  { %4519 = vmatpush1.bf16.msra.mxu1 %v6175_v6  ;;  %4192 = vmatprep.subr.bf16.mxu0 %v6180_v12  ;;  %v6259_v6 = vld [vmem:[#allocation8 + $0xa88] ss:$16 sps:$4 sm:$0xff]   ;;  %v6264_v12 = vld [vmem:[#allocation8 + $0xaa4] ss:$16 sps:$4 sm:$0xff]  }
 0x2d3   :  { %4520 = vmatprep.subr.bf16.mxu1 %v6183_v13  ;;  %v6267_v13 = vld [vmem:[#allocation8 + $0xaac] ss:$16 sps:$4 sm:$0xff]  }
 0x2d5   :  { %4193 = vmatpush1.bf16.msra.mxu0 %v6178_v14  ;;  %v6262_v14 = vld [vmem:[#allocation8 + $0xaa0] ss:$16 sps:$4 sm:$0xff]  }
 0x2d6   :  { %4521 = vmatpush1.bf16.msra.mxu1 %v6181_v15  ;;  %4194 = vmatprep.subr.bf16.mxu0 %v6186_v16  ;;  %v6265_v15 = vld [vmem:[#allocation8 + $0xaa8] ss:$16 sps:$4 sm:$0xff]   ;;  %v6270_v16 = vld [vmem:[#allocation8 + $0xac4] ss:$16 sps:$4 sm:$0xff]  }
 0x2d7   :  { %4522 = vmatprep.subr.bf16.mxu1 %v6189_v17  ;;  %v6273_v17 = vld [vmem:[#allocation8 + $0xacc] ss:$16 sps:$4 sm:$0xff]  }
 0x2d9   :  { %4195 = vmatpush1.bf16.msra.mxu0 %v6184_v18  ;;  %v6268_v18 = vld [vmem:[#allocation8 + $0xac0] ss:$16 sps:$4 sm:$0xff]  }
 0x2da   :  { %4523 = vmatpush1.bf16.msra.mxu1 %v6187_v19  ;;  %4196 = vmatprep.subr.bf16.mxu0 %v6192_v20  ;;  %v6271_v19 = vld [vmem:[#allocation8 + $0xac8] ss:$16 sps:$4 sm:$0xff]   ;;  %v6276_v20 = vld [vmem:[#allocation8 + $0xae4] ss:$16 sps:$4 sm:$0xff]  }
 0x2db   :  { %4524 = vmatprep.subr.bf16.mxu1 %v6195_v21  ;;  %v6279_v21 = vld [vmem:[#allocation8 + $0xaec] ss:$16 sps:$4 sm:$0xff]  }
 0x2dd   :  { %4197 = vmatpush1.bf16.msra.mxu0 %v6190_v22  ;;  %v6274_v22 = vld [vmem:[#allocation8 + $0xae0] ss:$16 sps:$4 sm:$0xff]  }
 0x2de   :  { %4525 = vmatpush1.bf16.msra.mxu1 %v6193_v45  ;;  %4198 = vmatprep.subr.bf16.mxu0 %v6198_v23  ;;  %v6277_v45 = vld [vmem:[#allocation8 + $0xae8] ss:$16 sps:$4 sm:$0xff]   ;;  %v6282_v23 = vld [vmem:[#allocation8 + $0xb04] ss:$16 sps:$4 sm:$0xff]  }
 0x2df   :  { %4526 = vmatprep.subr.bf16.mxu1 %v6201_v24  ;;  %v6285_v24 = vld [vmem:[#allocation8 + $0xb0c] ss:$16 sps:$4 sm:$0xff]  }
 0x2e1   :  { %4199 = vmatpush1.bf16.msra.mxu0 %v6196_v56  ;;  %v6280_v56 = vld [vmem:[#allocation8 + $0xb00] ss:$16 sps:$4 sm:$0xff]  }
 0x2e2   :  { %4527 = vmatpush1.bf16.msra.mxu1 %v6199_v25  ;;  %4200 = vmatprep.subr.bf16.mxu0 %v6204_v26  ;;  %v6283_v25 = vld [vmem:[#allocation8 + $0xb08] ss:$16 sps:$4 sm:$0xff]   ;;  %v6288_v26 = vld [vmem:[#allocation8 + $0xb24] ss:$16 sps:$4 sm:$0xff]  }
 0x2e3   :  { %4528 = vmatprep.subr.bf16.mxu1 %v6207_v27  ;;  %v6291_v27 = vld [vmem:[#allocation8 + $0xb2c] ss:$16 sps:$4 sm:$0xff]  }
 0x2e5   :  { %4201 = vmatpush1.bf16.msra.mxu0 %v6202_v28  ;;  %v6286_v28 = vld [vmem:[#allocation8 + $0xb20] ss:$16 sps:$4 sm:$0xff]  }
 0x2e6   :  { %4529 = vmatpush1.bf16.msra.mxu1 %v6205_v29  ;;  %4202 = vmatprep.subr.bf16.mxu0 %v6210_v30  ;;  %v6289_v29 = vld [vmem:[#allocation8 + $0xb28] ss:$16 sps:$4 sm:$0xff]   ;;  %v6294_v30 = vld [vmem:[#allocation8 + $0xb44] ss:$16 sps:$4 sm:$0xff]  }
 0x2e7   :  { %4530 = vmatprep.subr.bf16.mxu1 %v6213_v31  ;;  %v6297_v31 = vld [vmem:[#allocation8 + $0xb4c] ss:$16 sps:$4 sm:$0xff]  }
 0x2e9   :  { %4203 = vmatpush1.bf16.msra.mxu0 %v6208_v32  ;;  %v6292_v32 = vld [vmem:[#allocation8 + $0xb40] ss:$16 sps:$4 sm:$0xff]  }
 0x2ea   :  { %4531 = vmatpush1.bf16.msra.mxu1 %v6211_v33  ;;  %4204 = vmatprep.subr.bf16.mxu0 %v6216_v34  ;;  %v6295_v33 = vld [vmem:[#allocation8 + $0xb48] ss:$16 sps:$4 sm:$0xff]   ;;  %v6300_v34 = vld [vmem:[#allocation8 + $0xb64] ss:$16 sps:$4 sm:$0xff]  }
 0x2eb   :  { %4532 = vmatprep.subr.bf16.mxu1 %v6219_v52  ;;  %v6303_v52 = vld [vmem:[#allocation8 + $0xb6c] ss:$16 sps:$4 sm:$0xff]  }
 0x2ed   :  { %4205 = vmatpush1.bf16.msra.mxu0 %v6214_v35  ;;  %v6298_v35 = vld [vmem:[#allocation8 + $0xb60] ss:$16 sps:$4 sm:$0xff]  }
 0x2ee   :  { %4533 = vmatpush1.bf16.msra.mxu1 %v6217_v36  ;;  %4206 = vmatprep.subr.bf16.mxu0 %v6222_v37  ;;  %v6301_v36 = vld [vmem:[#allocation8 + $0xb68] ss:$16 sps:$4 sm:$0xff]   ;;  %v6306_v37 = vld [vmem:[#allocation8 + $0xb84] ss:$16 sps:$4 sm:$0xff]  }
 0x2ef   :  { %4534 = vmatprep.subr.bf16.mxu1 %v6225_v57  ;;  %v6309_v57 = vld [vmem:[#allocation8 + $0xb8c] ss:$16 sps:$4 sm:$0xff]  }
 0x2f1   :  { %4207 = vmatpush1.bf16.msra.mxu0 %v6220_v38  ;;  %v6304_v38 = vld [vmem:[#allocation8 + $0xb80] ss:$16 sps:$4 sm:$0xff]  }
 0x2f2   :  { %4535 = vmatpush1.bf16.msra.mxu1 %v6223_v39  ;;  %4208 = vmatprep.subr.bf16.mxu0 %v6228_v40  ;;  %v6307_v39 = vld [vmem:[#allocation8 + $0xb88] ss:$16 sps:$4 sm:$0xff]   ;;  %v6312_v40 = vld [vmem:[#allocation8 + $0xba4] ss:$16 sps:$4 sm:$0xff]  }
 0x2f3   :  { %4536 = vmatprep.subr.bf16.mxu1 %v6231_v41  ;;  %v6315_v41 = vld [vmem:[#allocation8 + $0xbac] ss:$16 sps:$4 sm:$0xff]  }
 0x2f5   :  { %4209 = vmatpush1.bf16.msra.mxu0 %v6226_v42  ;;  %v6310_v42 = vld [vmem:[#allocation8 + $0xba0] ss:$16 sps:$4 sm:$0xff]  }
 0x2f6   :  { %4537 = vmatpush1.bf16.msra.mxu1 %v6229_v43  ;;  %4219 = vmatprep.subr.bf16.mxu0 %v6234_v44  ;;  %v6313_v43 = vld [vmem:[#allocation8 + $0xba8] ss:$16 sps:$4 sm:$0xff]   ;;  %v6318_v44 = vld [vmem:[#allocation8 + $0xbc4] ss:$16 sps:$4 sm:$0xff]  }
 0x2f7   :  { %4547 = vmatprep.subr.bf16.mxu1 %v6237_v53  ;;  %v6321_v53 = vld [vmem:[#allocation8 + $0xbcc] ss:$16 sps:$4 sm:$0xff]  }
 0x2f8   :  { %4211 = vmatmul.mubr.bf16.vlgmr.msra.gmra.mrb[8].mxu0 %v912_v47 }
 0x2f9   :  { %4539 = vmatmul.mubr.bf16.vlgmr.msra.gmra.mrb[8].mxu1 %v912_v47  ;;  %4220 = vmatpush1.bf16.msra.mxu0 %v6232_v46  ;;  %v6316_v46 = vld [vmem:[#allocation8 + $0xbc0] ss:$16 sps:$4 sm:$0xff]   ;;  %v6319_v47 = vld [vmem:[#allocation8 + $0xbc8] ss:$16 sps:$4 sm:$0xff]  }
 0x2fa   :  { %4251 = vmatprep.mubr.bf16.mxu0 %v915_v49  ;;  %4548 = vmatpush1.bf16.msra.mxu1 %v6235_v48  ;;  %v6324_v48 = vld [vmem:[#allocation8 + $0xbe4] ss:$16 sps:$4 sm:$0xff]  }
 0x2fb   :  { %4579 = vmatprep.mubr.bf16.mxu1 %v915_v49  ;;  %4221 = vmatprep.subr.bf16.mxu0 %v6240_v1  ;;  %v6327_v1 = vld [vmem:[#allocation8 + $0xbec] ss:$16 sps:$4 sm:$0xff]   ;;  %v6322_v49 = vld [vmem:[#allocation8 + $0xbe0] ss:$16 sps:$4 sm:$0xff]  }
 0x2fc   :  { %4549 = vmatprep.subr.bf16.mxu1 %v6243_v50  ;;  %v6325_v50 = vld [vmem:[#allocation8 + $0xbe8] ss:$16 sps:$4 sm:$0xff]  }
 0x2fd   :  { %4222 = vmatpush1.bf16.msra.mxu0 %v6238_v51  ;;  %v6330_v51 = vld [vmem:[#allocation8 + $0xc04] ss:$16 sps:$4 sm:$0xff]  }
 0x2fe   :  { %4550 = vmatpush1.bf16.msra.mxu1 %v6241_v54  ;;  %4223 = vmatprep.subr.bf16.mxu0 %v6246_v0  ;;  %v6333_v54 = vld [vmem:[#allocation8 + $0xc0c] ss:$16 sps:$4 sm:$0xff]   ;;  %v6328_v0 = vld [vmem:[#allocation8 + $0xc00] ss:$16 sps:$4 sm:$0xff]  }
 0x2ff   :  { %4551 = vmatprep.subr.bf16.mxu1 %v6249_v62  ;;  %v914_v62 = vpack.c.bf16 %v6904_v63, %v6904_v63  ;;  %v6345_v63 = vld [vmem:[#allocation8 + $0xc4c] ss:$16 sps:$4 sm:$0xff]  }
 0x301   :  { %4224 = vmatpush1.bf16.msra.mxu0 %v6244_v55  ;;  %v6331_v55 = vld [vmem:[#allocation8 + $0xc08] ss:$16 sps:$4 sm:$0xff]  }
 0x302   :  { %4552 = vmatpush1.bf16.msra.mxu1 %v6247_v58  ;;  %4225 = vmatprep.subr.bf16.mxu0 %v6252_v59  ;;  %v6336_v58 = vld [vmem:[#allocation8 + $0xc24] ss:$16 sps:$4 sm:$0xff]   ;;  %v917_v59 = vpack.c.bf16 %v6914_v10, %v6914_v10  ;;  %v6351_v10 = vld [vmem:[#allocation8 + $0xc6c] ss:$16 sps:$4 sm:$0xff]  }
 0x303   :  { %4553 = vmatprep.subr.bf16.mxu1 %v6255_v2  ;;  %v6339_v2 = vld [vmem:[#allocation8 + $0xc2c] ss:$16 sps:$4 sm:$0xff]  }
 0x305   :  { %4226 = vmatpush1.bf16.msra.mxu0 %v6250_v60  ;;  %v6334_v60 = vld [vmem:[#allocation8 + $0xc20] ss:$16 sps:$4 sm:$0xff]  }
 0x306   :  { %4554 = vmatpush1.bf16.msra.mxu1 %v6253_v61  ;;  %4227 = vmatprep.subr.bf16.mxu0 %v6258_v3  ;;  %v6337_v61 = vld [vmem:[#allocation8 + $0xc28] ss:$16 sps:$4 sm:$0xff]   ;;  %v6342_v3 = vld [vmem:[#allocation8 + $0xc44] ss:$16 sps:$4 sm:$0xff]  }
 0x307   :  { %4555 = vmatprep.subr.bf16.mxu1 %v6261_v4  ;;  %v6340_v4 = vld [vmem:[#allocation8 + $0xc40] ss:$16 sps:$4 sm:$0xff]  }
 0x309   :  { %4228 = vmatpush1.bf16.msra.mxu0 %v6256_v5  ;;  %v6343_v5 = vld [vmem:[#allocation8 + $0xc48] ss:$16 sps:$4 sm:$0xff]  }
 0x30a   :  { %4556 = vmatpush1.bf16.msra.mxu1 %v6259_v6  ;;  %4229 = vmatprep.subr.bf16.mxu0 %v6264_v12  ;;  %v6348_v6 = vld [vmem:[#allocation8 + $0xc64] ss:$16 sps:$4 sm:$0xff]   ;;  %v6346_v12 = vld [vmem:[#allocation8 + $0xc60] ss:$16 sps:$4 sm:$0xff]  }
 0x30b   :  { %4557 = vmatprep.subr.bf16.mxu1 %v6267_v13  ;;  %v6349_v13 = vld [vmem:[#allocation8 + $0xc68] ss:$16 sps:$4 sm:$0xff]  }
 0x30d   :  { %4230 = vmatpush1.bf16.msra.mxu0 %v6262_v14  ;;  %v6354_v14 = vld [vmem:[#allocation8 + $0xc84] ss:$16 sps:$4 sm:$0xff]  }
 0x30e   :  { %4558 = vmatpush1.bf16.msra.mxu1 %v6265_v15  ;;  %4231 = vmatprep.subr.bf16.mxu0 %v6270_v16  ;;  %v6357_v15 = vld [vmem:[#allocation8 + $0xc8c] ss:$16 sps:$4 sm:$0xff]   ;;  %v6352_v16 = vld [vmem:[#allocation8 + $0xc80] ss:$16 sps:$4 sm:$0xff]  }
 0x30f   :  { %4559 = vmatprep.subr.bf16.mxu1 %v6273_v17  ;;  %v6355_v17 = vld [vmem:[#allocation8 + $0xc88] ss:$16 sps:$4 sm:$0xff]  }
 0x311   :  { %4232 = vmatpush1.bf16.msra.mxu0 %v6268_v18  ;;  %v6360_v18 = vld [vmem:[#allocation8 + $0xca4] ss:$16 sps:$4 sm:$0xff]  }
 0x312   :  { %4560 = vmatpush1.bf16.msra.mxu1 %v6271_v19  ;;  %4233 = vmatprep.subr.bf16.mxu0 %v6276_v20  ;;  %v6363_v19 = vld [vmem:[#allocation8 + $0xcac] ss:$16 sps:$4 sm:$0xff]   ;;  %v6358_v20 = vld [vmem:[#allocation8 + $0xca0] ss:$16 sps:$4 sm:$0xff]  }
 0x313   :  { %4561 = vmatprep.subr.bf16.mxu1 %v6279_v21  ;;  %v6361_v21 = vld [vmem:[#allocation8 + $0xca8] ss:$16 sps:$4 sm:$0xff]  }
 0x315   :  { %4234 = vmatpush1.bf16.msra.mxu0 %v6274_v22  ;;  %v6366_v22 = vld [vmem:[#allocation8 + $0xcc4] ss:$16 sps:$4 sm:$0xff]  }
 0x316   :  { %4562 = vmatpush1.bf16.msra.mxu1 %v6277_v45  ;;  %4235 = vmatprep.subr.bf16.mxu0 %v6282_v23  ;;  %v6369_v45 = vld [vmem:[#allocation8 + $0xccc] ss:$16 sps:$4 sm:$0xff]   ;;  %v6364_v23 = vld [vmem:[#allocation8 + $0xcc0] ss:$16 sps:$4 sm:$0xff]  }
 0x317   :  { %4563 = vmatprep.subr.bf16.mxu1 %v6285_v24  ;;  %v6367_v24 = vld [vmem:[#allocation8 + $0xcc8] ss:$16 sps:$4 sm:$0xff]  }
 0x319   :  { %4236 = vmatpush1.bf16.msra.mxu0 %v6280_v56  ;;  %v6372_v56 = vld [vmem:[#allocation8 + $0xce4] ss:$16 sps:$4 sm:$0xff]  }
 0x31a   :  { %4564 = vmatpush1.bf16.msra.mxu1 %v6283_v25  ;;  %4237 = vmatprep.subr.bf16.mxu0 %v6288_v26  ;;  %v6375_v25 = vld [vmem:[#allocation8 + $0xcec] ss:$16 sps:$4 sm:$0xff]   ;;  %v6370_v26 = vld [vmem:[#allocation8 + $0xce0] ss:$16 sps:$4 sm:$0xff]  }
 0x31b   :  { %4565 = vmatprep.subr.bf16.mxu1 %v6291_v27  ;;  %v6373_v27 = vld [vmem:[#allocation8 + $0xce8] ss:$16 sps:$4 sm:$0xff]  }
 0x31d   :  { %4238 = vmatpush1.bf16.msra.mxu0 %v6286_v28  ;;  %v6378_v28 = vld [vmem:[#allocation8 + $0xd04] ss:$16 sps:$4 sm:$0xff]  }
 0x31e   :  { %4566 = vmatpush1.bf16.msra.mxu1 %v6289_v29  ;;  %4239 = vmatprep.subr.bf16.mxu0 %v6294_v30  ;;  %v6381_v29 = vld [vmem:[#allocation8 + $0xd0c] ss:$16 sps:$4 sm:$0xff]   ;;  %v6376_v30 = vld [vmem:[#allocation8 + $0xd00] ss:$16 sps:$4 sm:$0xff]  }
 0x31f   :  { %4567 = vmatprep.subr.bf16.mxu1 %v6297_v31  ;;  %v6379_v31 = vld [vmem:[#allocation8 + $0xd08] ss:$16 sps:$4 sm:$0xff]  }
 0x321   :  { %4240 = vmatpush1.bf16.msra.mxu0 %v6292_v32  ;;  %v6384_v32 = vld [vmem:[#allocation8 + $0xd24] ss:$16 sps:$4 sm:$0xff]  }
 0x322   :  { %4568 = vmatpush1.bf16.msra.mxu1 %v6295_v33  ;;  %4241 = vmatprep.subr.bf16.mxu0 %v6300_v34  ;;  %v6387_v33 = vld [vmem:[#allocation8 + $0xd2c] ss:$16 sps:$4 sm:$0xff]   ;;  %v6382_v34 = vld [vmem:[#allocation8 + $0xd20] ss:$16 sps:$4 sm:$0xff]  }
 0x323   :  { %4569 = vmatprep.subr.bf16.mxu1 %v6303_v52  ;;  %v6385_v52 = vld [vmem:[#allocation8 + $0xd28] ss:$16 sps:$4 sm:$0xff]  }
 0x325   :  { %4242 = vmatpush1.bf16.msra.mxu0 %v6298_v35  ;;  %v6390_v35 = vld [vmem:[#allocation8 + $0xd44] ss:$16 sps:$4 sm:$0xff]  }
 0x326   :  { %4570 = vmatpush1.bf16.msra.mxu1 %v6301_v36  ;;  %4243 = vmatprep.subr.bf16.mxu0 %v6306_v37  ;;  %v6393_v36 = vld [vmem:[#allocation8 + $0xd4c] ss:$16 sps:$4 sm:$0xff]   ;;  %v6388_v37 = vld [vmem:[#allocation8 + $0xd40] ss:$16 sps:$4 sm:$0xff]  }
 0x327   :  { %4571 = vmatprep.subr.bf16.mxu1 %v6309_v57  ;;  %v6391_v57 = vld [vmem:[#allocation8 + $0xd48] ss:$16 sps:$4 sm:$0xff]  }
 0x329   :  { %4244 = vmatpush1.bf16.msra.mxu0 %v6304_v38  ;;  %v6396_v38 = vld [vmem:[#allocation8 + $0xd64] ss:$16 sps:$4 sm:$0xff]  }
 0x32a   :  { %4572 = vmatpush1.bf16.msra.mxu1 %v6307_v39  ;;  %4245 = vmatprep.subr.bf16.mxu0 %v6312_v40  ;;  %v6399_v39 = vld [vmem:[#allocation8 + $0xd6c] ss:$16 sps:$4 sm:$0xff]   ;;  %v6394_v40 = vld [vmem:[#allocation8 + $0xd60] ss:$16 sps:$4 sm:$0xff]  }
 0x32b   :  { %4573 = vmatprep.subr.bf16.mxu1 %v6315_v41  ;;  %v6397_v41 = vld [vmem:[#allocation8 + $0xd68] ss:$16 sps:$4 sm:$0xff]  }
 0x32d   :  { %4246 = vmatpush1.bf16.msra.mxu0 %v6310_v42  ;;  %v6402_v42 = vld [vmem:[#allocation8 + $0xd84] ss:$16 sps:$4 sm:$0xff]  }
 0x32e   :  { %4574 = vmatpush1.bf16.msra.mxu1 %v6313_v43  ;;  %4247 = vmatprep.subr.bf16.mxu0 %v6318_v44  ;;  %v6405_v43 = vld [vmem:[#allocation8 + $0xd8c] ss:$16 sps:$4 sm:$0xff]   ;;  %v6400_v44 = vld [vmem:[#allocation8 + $0xd80] ss:$16 sps:$4 sm:$0xff]  }
 0x32f   :  { %4575 = vmatprep.subr.bf16.mxu1 %v6321_v53  ;;  %v6403_v53 = vld [vmem:[#allocation8 + $0xd88] ss:$16 sps:$4 sm:$0xff]  }
 0x331   :  { %4248 = vmatpush1.bf16.msra.mxu0 %v6316_v46  ;;  %v6408_v46 = vld [vmem:[#allocation8 + $0xda4] ss:$16 sps:$4 sm:$0xff]  }
 0x332   :  { %4576 = vmatpush1.bf16.msra.mxu1 %v6319_v47  ;;  %4249 = vmatprep.subr.bf16.mxu0 %v6324_v48  ;;  %v6411_v47 = vld [vmem:[#allocation8 + $0xdac] ss:$16 sps:$4 sm:$0xff]   ;;  %v6406_v48 = vld [vmem:[#allocation8 + $0xda0] ss:$16 sps:$4 sm:$0xff]  }
 0x333   :  { %4577 = vmatprep.subr.bf16.mxu1 %v6327_v1  ;;  %v6409_v1 = vld [vmem:[#allocation8 + $0xda8] ss:$16 sps:$4 sm:$0xff]  }
 0x335   :  { %4250 = vmatpush1.bf16.msra.mxu0 %v6322_v49  ;;  %v6414_v49 = vld [vmem:[#allocation8 + $0xdc4] ss:$16 sps:$4 sm:$0xff]  }
 0x336   :  { %4578 = vmatpush1.bf16.msra.mxu1 %v6325_v50  ;;  %4260 = vmatprep.subr.bf16.mxu0 %v6330_v51  ;;  %v6417_v50 = vld [vmem:[#allocation8 + $0xdcc] ss:$16 sps:$4 sm:$0xff]   ;;  %v6412_v51 = vld [vmem:[#allocation8 + $0xdc0] ss:$16 sps:$4 sm:$0xff]  }
 0x337   :  { %4588 = vmatprep.subr.bf16.mxu1 %v6333_v54  ;;  %v6415_v54 = vld [vmem:[#allocation8 + $0xdc8] ss:$16 sps:$4 sm:$0xff]  }
 0x338   :  { %4252 = vmatmul.mubr.bf16.vlgmr.msra.gmra.mrb[8].mxu0 %v914_v62 }
 0x339   :  { %4580 = vmatmul.mubr.bf16.vlgmr.msra.gmra.mrb[8].mxu1 %v914_v62  ;;  %4261 = vmatpush1.bf16.msra.mxu0 %v6328_v0  ;;  %v6420_v0 = vld [vmem:[#allocation8 + $0xde4] ss:$16 sps:$4 sm:$0xff]   ;;  %v6423_v62 = vld [vmem:[#allocation8 + $0xdec] ss:$16 sps:$4 sm:$0xff]  }
 0x33a   :  { %4292 = vmatprep.mubr.bf16.mxu0 %v917_v59  ;;  %4589 = vmatpush1.bf16.msra.mxu1 %v6331_v55  ;;  %v6418_v55 = vld [vmem:[#allocation8 + $0xde0] ss:$16 sps:$4 sm:$0xff]  }
 0x33b   :  { %4620 = vmatprep.mubr.bf16.mxu1 %v917_v59  ;;  %4262 = vmatprep.subr.bf16.mxu0 %v6336_v58  ;;  %v6421_v58 = vld [vmem:[#allocation8 + $0xde8] ss:$16 sps:$4 sm:$0xff]   ;;  %v6426_v59 = vld [vmem:[#allocation8 + $0xe04] ss:$16 sps:$4 sm:$0xff]  }
 0x33c   :  { %4590 = vmatprep.subr.bf16.mxu1 %v6339_v2  ;;  %v6429_v2 = vld [vmem:[#allocation8 + $0xe0c] ss:$16 sps:$4 sm:$0xff]  }
 0x33d   :  { %4263 = vmatpush1.bf16.msra.mxu0 %v6334_v60  ;;  %v6424_v60 = vld [vmem:[#allocation8 + $0xe00] ss:$16 sps:$4 sm:$0xff]  }
 0x33e   :  { %4591 = vmatpush1.bf16.msra.mxu1 %v6337_v61  ;;  %4264 = vmatprep.subr.bf16.mxu0 %v6342_v3  ;;  %v916_v61 = vpack.c.bf16 %v6910_v7, %v6910_v7  ;;  %v6427_v3 = vld [vmem:[#allocation8 + $0xe08] ss:$16 sps:$4 sm:$0xff]   ;;  %v6441_v7 = vld [vmem:[#allocation8 + $0xe4c] ss:$16 sps:$4 sm:$0xff]  }
 0x33f   :  { %4592 = vmatprep.subr.bf16.mxu1 %v6345_v63  ;;  %v6432_v63 = vld [vmem:[#allocation8 + $0xe24] ss:$16 sps:$4 sm:$0xff]  }
 0x341   :  { %4265 = vmatpush1.bf16.msra.mxu0 %v6340_v4  ;;  %v919_v4 = vpack.c.bf16 %v6916_v11, %v6916_v11  ;;  %v6447_v11 = vld [vmem:[#allocation8 + $0xe6c] ss:$16 sps:$4 sm:$0xff]  }
 0x342   :  { %4593 = vmatpush1.bf16.msra.mxu1 %v6343_v5  ;;  %4266 = vmatprep.subr.bf16.mxu0 %v6348_v6  ;;  %v6435_v5 = vld [vmem:[#allocation8 + $0xe2c] ss:$16 sps:$4 sm:$0xff]   ;;  %v6430_v6 = vld [vmem:[#allocation8 + $0xe20] ss:$16 sps:$4 sm:$0xff]  }
 0x343   :  { %4594 = vmatprep.subr.bf16.mxu1 %v6351_v10  ;;  %v6433_v10 = vld [vmem:[#allocation8 + $0xe28] ss:$16 sps:$4 sm:$0xff]  }
 0x345   :  { %4267 = vmatpush1.bf16.msra.mxu0 %v6346_v12  ;;  %v6438_v12 = vld [vmem:[#allocation8 + $0xe44] ss:$16 sps:$4 sm:$0xff]  }
 0x346   :  { %4595 = vmatpush1.bf16.msra.mxu1 %v6349_v13  ;;  %4268 = vmatprep.subr.bf16.mxu0 %v6354_v14  ;;  %v6436_v13 = vld [vmem:[#allocation8 + $0xe40] ss:$16 sps:$4 sm:$0xff]   ;;  %v6439_v14 = vld [vmem:[#allocation8 + $0xe48] ss:$16 sps:$4 sm:$0xff]  }
 0x347   :  { %4596 = vmatprep.subr.bf16.mxu1 %v6357_v15  ;;  %v6444_v15 = vld [vmem:[#allocation8 + $0xe64] ss:$16 sps:$4 sm:$0xff]  }
 0x349   :  { %4269 = vmatpush1.bf16.msra.mxu0 %v6352_v16  ;;  %v6442_v16 = vld [vmem:[#allocation8 + $0xe60] ss:$16 sps:$4 sm:$0xff]  }
 0x34a   :  { %4597 = vmatpush1.bf16.msra.mxu1 %v6355_v17  ;;  %4270 = vmatprep.subr.bf16.mxu0 %v6360_v18  ;;  %v6445_v17 = vld [vmem:[#allocation8 + $0xe68] ss:$16 sps:$4 sm:$0xff]   ;;  %v6450_v18 = vld [vmem:[#allocation8 + $0xe84] ss:$16 sps:$4 sm:$0xff]  }
 0x34b   :  { %4598 = vmatprep.subr.bf16.mxu1 %v6363_v19  ;;  %v6453_v19 = vld [vmem:[#allocation8 + $0xe8c] ss:$16 sps:$4 sm:$0xff]  }
 0x34d   :  { %4271 = vmatpush1.bf16.msra.mxu0 %v6358_v20  ;;  %v6448_v20 = vld [vmem:[#allocation8 + $0xe80] ss:$16 sps:$4 sm:$0xff]  }
 0x34e   :  { %4599 = vmatpush1.bf16.msra.mxu1 %v6361_v21  ;;  %4272 = vmatprep.subr.bf16.mxu0 %v6366_v22  ;;  %v6451_v21 = vld [vmem:[#allocation8 + $0xe88] ss:$16 sps:$4 sm:$0xff]   ;;  %v6456_v22 = vld [vmem:[#allocation8 + $0xea4] ss:$16 sps:$4 sm:$0xff]  }
 0x34f   :  { %4600 = vmatprep.subr.bf16.mxu1 %v6369_v45  ;;  %v6459_v45 = vld [vmem:[#allocation8 + $0xeac] ss:$16 sps:$4 sm:$0xff]  }
 0x351   :  { %4273 = vmatpush1.bf16.msra.mxu0 %v6364_v23  ;;  %v6454_v23 = vld [vmem:[#allocation8 + $0xea0] ss:$16 sps:$4 sm:$0xff]  }
 0x352   :  { %4601 = vmatpush1.bf16.msra.mxu1 %v6367_v24  ;;  %4274 = vmatprep.subr.bf16.mxu0 %v6372_v56  ;;  %v6457_v24 = vld [vmem:[#allocation8 + $0xea8] ss:$16 sps:$4 sm:$0xff]   ;;  %v6462_v56 = vld [vmem:[#allocation8 + $0xec4] ss:$16 sps:$4 sm:$0xff]  }
 0x353   :  { %4602 = vmatprep.subr.bf16.mxu1 %v6375_v25  ;;  %v6465_v25 = vld [vmem:[#allocation8 + $0xecc] ss:$16 sps:$4 sm:$0xff]  }
 0x355   :  { %4275 = vmatpush1.bf16.msra.mxu0 %v6370_v26  ;;  %v6460_v26 = vld [vmem:[#allocation8 + $0xec0] ss:$16 sps:$4 sm:$0xff]  }
 0x356   :  { %4603 = vmatpush1.bf16.msra.mxu1 %v6373_v27  ;;  %4276 = vmatprep.subr.bf16.mxu0 %v6378_v28  ;;  %v6463_v27 = vld [vmem:[#allocation8 + $0xec8] ss:$16 sps:$4 sm:$0xff]   ;;  %v6468_v28 = vld [vmem:[#allocation8 + $0xee4] ss:$16 sps:$4 sm:$0xff]  }
 0x357   :  { %4604 = vmatprep.subr.bf16.mxu1 %v6381_v29  ;;  %v6471_v29 = vld [vmem:[#allocation8 + $0xeec] ss:$16 sps:$4 sm:$0xff]  }
 0x359   :  { %4277 = vmatpush1.bf16.msra.mxu0 %v6376_v30  ;;  %v6466_v30 = vld [vmem:[#allocation8 + $0xee0] ss:$16 sps:$4 sm:$0xff]  }
 0x35a   :  { %4605 = vmatpush1.bf16.msra.mxu1 %v6379_v31  ;;  %4278 = vmatprep.subr.bf16.mxu0 %v6384_v32  ;;  %v6469_v31 = vld [vmem:[#allocation8 + $0xee8] ss:$16 sps:$4 sm:$0xff]   ;;  %v6474_v32 = vld [vmem:[#allocation8 + $0xf04] ss:$16 sps:$4 sm:$0xff]  }
 0x35b   :  { %4606 = vmatprep.subr.bf16.mxu1 %v6387_v33  ;;  %v6477_v33 = vld [vmem:[#allocation8 + $0xf0c] ss:$16 sps:$4 sm:$0xff]  }
 0x35d   :  { %4279 = vmatpush1.bf16.msra.mxu0 %v6382_v34  ;;  %v6472_v34 = vld [vmem:[#allocation8 + $0xf00] ss:$16 sps:$4 sm:$0xff]  }
 0x35e   :  { %4607 = vmatpush1.bf16.msra.mxu1 %v6385_v52  ;;  %4280 = vmatprep.subr.bf16.mxu0 %v6390_v35  ;;  %v6475_v52 = vld [vmem:[#allocation8 + $0xf08] ss:$16 sps:$4 sm:$0xff]   ;;  %v6480_v35 = vld [vmem:[#allocation8 + $0xf24] ss:$16 sps:$4 sm:$0xff]  }
 0x35f   :  { %4608 = vmatprep.subr.bf16.mxu1 %v6393_v36  ;;  %v6483_v36 = vld [vmem:[#allocation8 + $0xf2c] ss:$16 sps:$4 sm:$0xff]  }
 0x361   :  { %4281 = vmatpush1.bf16.msra.mxu0 %v6388_v37  ;;  %v6478_v37 = vld [vmem:[#allocation8 + $0xf20] ss:$16 sps:$4 sm:$0xff]  }
 0x362   :  { %4609 = vmatpush1.bf16.msra.mxu1 %v6391_v57  ;;  %4282 = vmatprep.subr.bf16.mxu0 %v6396_v38  ;;  %v6481_v57 = vld [vmem:[#allocation8 + $0xf28] ss:$16 sps:$4 sm:$0xff]   ;;  %v6486_v38 = vld [vmem:[#allocation8 + $0xf44] ss:$16 sps:$4 sm:$0xff]  }
 0x363   :  { %4610 = vmatprep.subr.bf16.mxu1 %v6399_v39  ;;  %v6489_v39 = vld [vmem:[#allocation8 + $0xf4c] ss:$16 sps:$4 sm:$0xff]  }
 0x365   :  { %4283 = vmatpush1.bf16.msra.mxu0 %v6394_v40  ;;  %v6484_v40 = vld [vmem:[#allocation8 + $0xf40] ss:$16 sps:$4 sm:$0xff]  }
 0x366   :  { %4611 = vmatpush1.bf16.msra.mxu1 %v6397_v41  ;;  %4284 = vmatprep.subr.bf16.mxu0 %v6402_v42  ;;  %v6487_v41 = vld [vmem:[#allocation8 + $0xf48] ss:$16 sps:$4 sm:$0xff]   ;;  %v6492_v42 = vld [vmem:[#allocation8 + $0xf64] ss:$16 sps:$4 sm:$0xff]  }
 0x367   :  { %4612 = vmatprep.subr.bf16.mxu1 %v6405_v43  ;;  %v6495_v43 = vld [vmem:[#allocation8 + $0xf6c] ss:$16 sps:$4 sm:$0xff]  }
 0x369   :  { %4285 = vmatpush1.bf16.msra.mxu0 %v6400_v44  ;;  %v6490_v44 = vld [vmem:[#allocation8 + $0xf60] ss:$16 sps:$4 sm:$0xff]  }
 0x36a   :  { %4613 = vmatpush1.bf16.msra.mxu1 %v6403_v53  ;;  %4286 = vmatprep.subr.bf16.mxu0 %v6408_v46  ;;  %v6493_v53 = vld [vmem:[#allocation8 + $0xf68] ss:$16 sps:$4 sm:$0xff]   ;;  %v6498_v46 = vld [vmem:[#allocation8 + $0xf84] ss:$16 sps:$4 sm:$0xff]  }
 0x36b   :  { %4614 = vmatprep.subr.bf16.mxu1 %v6411_v47  ;;  %v6501_v47 = vld [vmem:[#allocation8 + $0xf8c] ss:$16 sps:$4 sm:$0xff]  }
 0x36d   :  { %4287 = vmatpush1.bf16.msra.mxu0 %v6406_v48  ;;  %v6496_v48 = vld [vmem:[#allocation8 + $0xf80] ss:$16 sps:$4 sm:$0xff]  }
 0x36e   :  { %4615 = vmatpush1.bf16.msra.mxu1 %v6409_v1  ;;  %4288 = vmatprep.subr.bf16.mxu0 %v6414_v49  ;;  %v6499_v1 = vld [vmem:[#allocation8 + $0xf88] ss:$16 sps:$4 sm:$0xff]   ;;  %v6504_v49 = vld [vmem:[#allocation8 + $0xfa4] ss:$16 sps:$4 sm:$0xff]  }
 0x36f   :  { %4616 = vmatprep.subr.bf16.mxu1 %v6417_v50  ;;  %v6507_v50 = vld [vmem:[#allocation8 + $0xfac] ss:$16 sps:$4 sm:$0xff]  }
 0x371   :  { %4289 = vmatpush1.bf16.msra.mxu0 %v6412_v51  ;;  %v6502_v51 = vld [vmem:[#allocation8 + $0xfa0] ss:$16 sps:$4 sm:$0xff]  }
 0x372   :  { %4617 = vmatpush1.bf16.msra.mxu1 %v6415_v54  ;;  %4290 = vmatprep.subr.bf16.mxu0 %v6420_v0  ;;  %v6505_v54 = vld [vmem:[#allocation8 + $0xfa8] ss:$16 sps:$4 sm:$0xff]   ;;  %v6510_v0 = vld [vmem:[#allocation8 + $0xfc4] ss:$16 sps:$4 sm:$0xff]  }
 0x373   :  { %4618 = vmatprep.subr.bf16.mxu1 %v6423_v62  ;;  %v6513_v62 = vld [vmem:[#allocation8 + $0xfcc] ss:$16 sps:$4 sm:$0xff]  }
 0x375   :  { %4291 = vmatpush1.bf16.msra.mxu0 %v6418_v55  ;;  %v6508_v55 = vld [vmem:[#allocation8 + $0xfc0] ss:$16 sps:$4 sm:$0xff]  }
 0x376   :  { %4619 = vmatpush1.bf16.msra.mxu1 %v6421_v58  ;;  %4301 = vmatprep.subr.bf16.mxu0 %v6426_v59  ;;  %v6511_v58 = vld [vmem:[#allocation8 + $0xfc8] ss:$16 sps:$4 sm:$0xff]   ;;  %v6516_v59 = vld [vmem:[#allocation8 + $0xfe4] ss:$16 sps:$4 sm:$0xff]  }
 0x377   :  { %4629 = vmatprep.subr.bf16.mxu1 %v6429_v2  ;;  %v6519_v2 = vld [vmem:[#allocation8 + $0xfec] ss:$16 sps:$4 sm:$0xff]  }
 0x378   :  { %4293 = vmatmul.mubr.bf16.vlgmr.msra.gmra.mrb[8].mxu0 %v916_v61 }
 0x379   :  { %4621 = vmatmul.mubr.bf16.vlgmr.msra.gmra.mrb[8].mxu1 %v916_v61  ;;  %4302 = vmatpush1.bf16.msra.mxu0 %v6424_v60  ;;  %v6514_v60 = vld [vmem:[#allocation8 + $0xfe0] ss:$16 sps:$4 sm:$0xff]   ;;  %v6517_v61 = vld [vmem:[#allocation8 + $0xfe8] ss:$16 sps:$4 sm:$0xff]  }
 0x37a   :  { %4333 = vmatprep.mubr.bf16.mxu0 %v919_v4  ;;  %4630 = vmatpush1.bf16.msra.mxu1 %v6427_v3  ;;  %v6520_v3 = vld [vmem:[#allocation11 + $0x40] sm:$0xff]  }
 0x37b   :  { %4661 = vmatprep.mubr.bf16.mxu1 %v919_v4  ;;  %4303 = vmatprep.subr.bf16.mxu0 %v6432_v63  ;;  %v6521_v63 = vld [vmem:[#allocation11 + $0xc0] sm:$0xff]  }
 0x37c   :  { %4631 = vmatprep.subr.bf16.mxu1 %v6435_v5  ;;  %v6522_v4 = vld [vmem:[#allocation11] sm:$0xff]   ;;  %v918_v5 = vpack.c.bf16 %v6912_v9, %v6912_v9  ;;  %v6531_v9 = vld [vmem:[#allocation11 + $0x90] sm:$0xff]  }
 0x37d   :  { %4304 = vmatpush1.bf16.msra.mxu0 %v6430_v6  ;;  %v6523_v6 = vld [vmem:[#allocation11 + $0x80] sm:$0xff]  }
 0x37e   :  { %4632 = vmatpush1.bf16.msra.mxu1 %v6433_v10  ;;  %4305 = vmatprep.subr.bf16.mxu0 %v6438_v12  ;;  %v6524_v10 = vld [vmem:[#allocation11 + $0x48] sm:$0xff]  }
 0x37f   :  { %4633 = vmatprep.subr.bf16.mxu1 %v6441_v7  ;;  %v6525_v12 = vld [vmem:[#allocation11 + $0xc8] sm:$0xff]  }
 0x380   :  { %v6526_v7 = vld [vmem:[#allocation11 + $0x8] sm:$0xff]  }
 0x381   :  { %4306 = vmatpush1.bf16.msra.mxu0 %v6436_v13  ;;  %v6527_v13 = vld [vmem:[#allocation11 + $0x88] sm:$0xff]  }
 0x382   :  { %4634 = vmatpush1.bf16.msra.mxu1 %v6439_v14  ;;  %4307 = vmatprep.subr.bf16.mxu0 %v6444_v15  ;;  %v6528_v14 = vld [vmem:[#allocation11 + $0x50] sm:$0xff]  }
 0x383   :  { %4635 = vmatprep.subr.bf16.mxu1 %v6447_v11  ;;  %v6529_v15 = vld [vmem:[#allocation11 + $0xd0] sm:$0xff]  }
 0x384   :  { %v6530_v11 = vld [vmem:[#allocation11 + $0x10] sm:$0xff]  }
 0x385   :  { %4308 = vmatpush1.bf16.msra.mxu0 %v6442_v16  ;;  %v6532_v16 = vld [vmem:[#allocation11 + $0x58] sm:$0xff]  }
 0x386   :  { %4636 = vmatpush1.bf16.msra.mxu1 %v6445_v17  ;;  %4309 = vmatprep.subr.bf16.mxu0 %v6450_v18  ;;  %v6533_v17 = vld [vmem:[#allocation11 + $0xd8] sm:$0xff]  }
 0x387   :  { %4637 = vmatprep.subr.bf16.mxu1 %v6453_v19  ;;  %v6534_v18 = vld [vmem:[#allocation11 + $0x18] sm:$0xff]  }
 0x388   :  { %v6535_v19 = vld [vmem:[#allocation11 + $0x98] sm:$0xff]  }
 0x389   :  { %4310 = vmatpush1.bf16.msra.mxu0 %v6448_v20  ;;  %v6536_v20 = vld [vmem:[#allocation11 + $0x60] sm:$0xff]  }
 0x38a   :  { %4638 = vmatpush1.bf16.msra.mxu1 %v6451_v21  ;;  %4311 = vmatprep.subr.bf16.mxu0 %v6456_v22  ;;  %v6537_v21 = vld [vmem:[#allocation11 + $0xe0] sm:$0xff]  }
 0x38b   :  { %4639 = vmatprep.subr.bf16.mxu1 %v6459_v45  ;;  %v6538_v22 = vld [vmem:[#allocation11 + $0x20] sm:$0xff]  }
 0x38c   :  { %v6539_v45 = vld [vmem:[#allocation11 + $0xa0] sm:$0xff]  }
 0x38d   :  { %4312 = vmatpush1.bf16.msra.mxu0 %v6454_v23  ;;  %v6540_v23 = vld [vmem:[#allocation11 + $0x68] sm:$0xff]  }
 0x38e   :  { %4640 = vmatpush1.bf16.msra.mxu1 %v6457_v24  ;;  %4313 = vmatprep.subr.bf16.mxu0 %v6462_v56  ;;  %v6541_v24 = vld [vmem:[#allocation11 + $0xe8] sm:$0xff]  }
 0x38f   :  { %4641 = vmatprep.subr.bf16.mxu1 %v6465_v25  ;;  %v6542_v56 = vld [vmem:[#allocation11 + $0x28] sm:$0xff]  }
 0x390   :  { %v6543_v25 = vld [vmem:[#allocation11 + $0xa8] sm:$0xff]  }
 0x391   :  { %4314 = vmatpush1.bf16.msra.mxu0 %v6460_v26  ;;  %v6544_v26 = vld [vmem:[#allocation11 + $0x70] sm:$0xff]  }
 0x392   :  { %4642 = vmatpush1.bf16.msra.mxu1 %v6463_v27  ;;  %4315 = vmatprep.subr.bf16.mxu0 %v6468_v28  ;;  %v6545_v27 = vld [vmem:[#allocation11 + $0xf0] sm:$0xff]  }
 0x393   :  { %4643 = vmatprep.subr.bf16.mxu1 %v6471_v29  ;;  %v6546_v28 = vld [vmem:[#allocation11 + $0x30] sm:$0xff]  }
 0x394   :  { %v6547_v29 = vld [vmem:[#allocation11 + $0xb0] sm:$0xff]  }
 0x395   :  { %4316 = vmatpush1.bf16.msra.mxu0 %v6466_v30  ;;  %v6548_v30 = vld [vmem:[#allocation11 + $0x78] sm:$0xff]  }
 0x396   :  { %4644 = vmatpush1.bf16.msra.mxu1 %v6469_v31  ;;  %4317 = vmatprep.subr.bf16.mxu0 %v6474_v32  ;;  %v6549_v31 = vld [vmem:[#allocation11 + $0xf8] sm:$0xff]  }
 0x397   :  { %4645 = vmatprep.subr.bf16.mxu1 %v6477_v33  ;;  %v6550_v32 = vld [vmem:[#allocation11 + $0x38] sm:$0xff]  }
 0x398   :  { %v6551_v33 = vld [vmem:[#allocation11 + $0xb8] sm:$0xff]  }
 0x399   :  { %4318 = vmatpush1.bf16.msra.mxu0 %v6472_v34  ;;  %v1436_v34 = vsub.s32 0, %v6865_v8 }
 0x39a   :  { %4646 = vmatpush1.bf16.msra.mxu1 %v6475_v52  ;;  %4319 = vmatprep.subr.bf16.mxu0 %v6480_v35  ;;  %v1432_v52 = vld [vmem:[#allocation9] sm:$0xf]  ;;  %v1444_v35 = vsub.s32 2, %v6865_v8 }
 0x39b   :  { %4647 = vmatprep.subr.bf16.mxu1 %v6483_v36  ;;  %v1440_v36 = vsub.s32 1, %v6865_v8 }
 0x39d   :  { %4320 = vmatpush1.bf16.msra.mxu0 %v6478_v37  ;;  %v1448_v37 = vsub.s32 3, %v6865_v8 }
 0x39e   :  { %4648 = vmatpush1.bf16.msra.mxu1 %v6481_v57  ;;  %4321 = vmatprep.subr.bf16.mxu0 %v6486_v38  ;;  %v1437_v57 = vrot.slane %v1432_v52, %v1436_v34  ;;  %v1445_v38 = vrot.slane %v1432_v52, %v1444_v35 }
 0x39f   :  { %4649 = vmatprep.subr.bf16.mxu1 %v6489_v39  ;;  %v1441_v39 = vrot.slane %v1432_v52, %v1440_v36 }
 0x3a1   :  { %4322 = vmatpush1.bf16.msra.mxu0 %v6484_v40  ;;  %v1449_v40 = vrot.slane %v1432_v52, %v1448_v37 }
 0x3a2   :  { %4650 = vmatpush1.bf16.msra.mxu1 %v6487_v41  ;;  %4323 = vmatprep.subr.bf16.mxu0 %v6492_v42 }
 0x3a3   :  { %4651 = vmatprep.subr.bf16.mxu1 %v6495_v43 }
 0x3a5   :  { %4324 = vmatpush1.bf16.msra.mxu0 %v6490_v44 }
 0x3a6   :  { %4652 = vmatpush1.bf16.msra.mxu1 %v6493_v53  ;;  %4325 = vmatprep.subr.bf16.mxu0 %v6498_v46 }
 0x3a7   :  { %4653 = vmatprep.subr.bf16.mxu1 %v6501_v47 }
 0x3a9   :  { %4326 = vmatpush1.bf16.msra.mxu0 %v6496_v48 }
 0x3aa   :  { %4654 = vmatpush1.bf16.msra.mxu1 %v6499_v1  ;;  %4327 = vmatprep.subr.bf16.mxu0 %v6504_v49 }
 0x3ab   :  { %4655 = vmatprep.subr.bf16.mxu1 %v6507_v50 }
 0x3ad   :  { %4328 = vmatpush1.bf16.msra.mxu0 %v6502_v51 }
 0x3ae   :  { %4656 = vmatpush1.bf16.msra.mxu1 %v6505_v54  ;;  %4329 = vmatprep.subr.bf16.mxu0 %v6510_v0 }
 0x3af   :  { %4657 = vmatprep.subr.bf16.mxu1 %v6513_v62 }
 0x3b1   :  { %4330 = vmatpush1.bf16.msra.mxu0 %v6508_v55 }
 0x3b2   :  { %4658 = vmatpush1.bf16.msra.mxu1 %v6511_v58  ;;  %4331 = vmatprep.subr.bf16.mxu0 %v6516_v59 }
 0x3b3   :  { %4659 = vmatprep.subr.bf16.mxu1 %v6519_v2 }
 0x3b5   :  { %4332 = vmatpush1.bf16.msra.mxu0 %v6514_v60 }
 0x3b6   :  { %4660 = vmatpush1.bf16.msra.mxu1 %v6517_v61  ;;  %5628 = vmatprep.subr.bf16.mxu0 %v6520_v3  ;;  %v5576_v3 = vld [vmem:[#allocation12] ss:$0 sm:$0xff] }
 0x3b7   :  { %5650 = vmatprep.subr.bf16.mxu1 %v6521_v63 }
 0x3b8   :  { %4334 = vmatmul.mubr.bf16.vlgmr.msra.gmra.mrb[8].mxu0 %v918_v5 }
 0x3b9   :  { %4662 = vmatmul.mubr.bf16.vlgmr.msra.gmra.mrb[8].mxu1 %v918_v5  ;;  %5629 = vmatpush3.bf16.msra.mxu0 %v6522_v4 }
 0x3ba   :  { %5651 = vmatpush3.bf16.msra.mxu1 %v6523_v6  ;;  %5630 = vmatprep.subr.bf16.mxu0 %v6524_v10 }
 0x3bb   :  { %5652 = vmatprep.subr.bf16.mxu1 %v6525_v12 }
 0x3bd   :  { %5631 = vmatpush3.bf16.msra.mxu0 %v6526_v7 }
 0x3be   :  { %5653 = vmatpush3.bf16.msra.mxu1 %v6527_v13  ;;  %5632 = vmatprep.subr.bf16.mxu0 %v6528_v14 }
 0x3bf   :  { %5654 = vmatprep.subr.bf16.mxu1 %v6529_v15 }
 0x3c1   :  { %5633 = vmatpush3.bf16.msra.mxu0 %v6530_v11 }
 0x3c2   :  { %5655 = vmatpush3.bf16.msra.mxu1 %v6531_v9  ;;  %5634 = vmatprep.subr.bf16.mxu0 %v6532_v16 }
 0x3c3   :  { %5656 = vmatprep.subr.bf16.mxu1 %v6533_v17 }
 0x3c5   :  { %5635 = vmatpush3.bf16.msra.mxu0 %v6534_v18 }
 0x3c6   :  { %5657 = vmatpush3.bf16.msra.mxu1 %v6535_v19  ;;  %5636 = vmatprep.subr.bf16.mxu0 %v6536_v20 }
 0x3c7   :  { %5658 = vmatprep.subr.bf16.mxu1 %v6537_v21 }
 0x3c9   :  { %5637 = vmatpush3.bf16.msra.mxu0 %v6538_v22 }
 0x3ca   :  { %5659 = vmatpush3.bf16.msra.mxu1 %v6539_v45  ;;  %5638 = vmatprep.subr.bf16.mxu0 %v6540_v23 }
 0x3cb   :  { %5660 = vmatprep.subr.bf16.mxu1 %v6541_v24 }
 0x3cd   :  { %5639 = vmatpush3.bf16.msra.mxu0 %v6542_v56 }
 0x3ce   :  { %5661 = vmatpush3.bf16.msra.mxu1 %v6543_v25  ;;  %5640 = vmatprep.subr.bf16.mxu0 %v6544_v26 }
 0x3cf   :  { %5662 = vmatprep.subr.bf16.mxu1 %v6545_v27 }
 0x3d1   :  { %5641 = vmatpush3.bf16.msra.mxu0 %v6546_v28 }
 0x3d2   :  { %5663 = vmatpush3.bf16.msra.mxu1 %v6547_v29  ;;  %5642 = vmatprep.subr.bf16.mxu0 %v6548_v30 }
 0x3d3   :  { %5664 = vmatprep.subr.bf16.mxu1 %v6549_v31 }
 0x3d5   :  { %5643 = vmatpush3.bf16.msra.mxu0 %v6550_v32 }
 0x3d6   :  { %5665 = vmatpush3.bf16.msra.mxu1 %v6551_v33 }
 0x48b   :  { %v4335_v41 = vpop.f32.mrb[8].mxu0 }
 0x48c   :  { %v5672_v42 = vadd.f32 %v4335_v41, %v1437_v57  ;;  %v4663_v43 = vpop.f32.mrb[8].mxu1  ;;  %v4337_v44 = vpop.f32.mrb[9].mxu0 }
 0x48d   :  { %v5674_v53 = vadd.f32 %v4663_v43, %v1445_v38  ;;  %v5673_v46 = vadd.f32 %v4337_v44, %v1441_v39  ;;  %v4665_v47 = vpop.f32.mrb[9].mxu1  ;;  %v4339_v48 = vpop.f32.mrb[10].mxu0 }
 0x48e   :  { %v4670_v1 = vmax.f32 %v5672_v42, 0.0  ;;  %v5675_v49 = vadd.f32 %v4665_v47, %v1449_v40  ;;  %v4667_v50 = vpop.f32.mrb[10].mxu1  ;;  %v4340_v51 = vpop.f32.mrb[11].mxu0 }
 0x48f   :  { %v4672_v54 = vmax.f32 %v5674_v53, 0.0  ;;  %v4671_v0 = vmax.f32 %v5673_v46, 0.0  ;;  %v4668_v62 = vpop.f32.mrb[11].mxu1 }
 0x490   :  { %v4673_v8 = vmax.f32 %v5675_v49, 0.0  ;;  %v4674_v58 = vpack.c.bf16 %v4670_v1, %v4670_v1 }
 0x491   :  { %v4675_v55 = vpack.c.bf16 %v4671_v0, %v4671_v0  ;;  %v4676_v2 = vpack.c.bf16 %v4672_v54, %v4672_v54 }
 0x492   :  { %v4677_v59 = vpack.c.bf16 %v4673_v8, %v4673_v8 }
 0x493   :  { %4973 = vmatprep.mubr.bf16.mxu0 %v4675_v55 }
 0x494   :  { %5013 = vmatprep.mubr.bf16.mxu1 %v4677_v59  ;;  %4974 = vmatmul.mubr.bf16.vlgmr.msra.gmra.mrb[12].mxu0 %v4674_v58 }
 0x495   :  { %5014 = vmatmul.mubr.bf16.vlgmr.msra.gmra.mrb[12].mxu1 %v4676_v2 }
 0x567   :  { %v5644_v60 = vpop.f32.mrb[12].mxu0 }
 0x568   :  { %v5666_v61 = vpop.f32.mrb[12].mxu1  ;;  %v5645_v63 = vpop.f32.mrb[13].mxu0 }
 0x569   :  { %v5646_v4 = vadd.f32 %v5645_v63, %v5644_v60  ;;  %v5667_v5 = vpop.f32.mrb[13].mxu1  ;;  %v5647_v6 = vpop.f32.mrb[14].mxu0 }
 0x56a   :  { %v5668_v10 = vadd.f32 %v5667_v5, %v5666_v61  ;;  %v5669_v12 = vpop.f32.mrb[14].mxu1  ;;  %v5648_v7 = vpop.f32.mrb[15].mxu0 }
 0x56b   :  { %v4976_v13 = vadd.f32 %v5646_v4, %v5576_v3  ;;  %v5670_v14 = vpop.f32.mrb[15].mxu1 }
 0x56d   :  { %v5016_v15 = vadd.f32 %v5668_v10, %v4976_v13 }
 0x56f   :  { %5021 = vst [vmem:[#allocation14] sm:$0xff] %v5016_v15 }
 0x570   :  { %6695 = shalt.err (!%p6692_p10)
}
 0x571   :  { %s6696_s21 = scalar_lea.hbm %s6966_s6, 128 }
 0x572   :  { %p6697_p11 = scmp.ne.s32.totalorder %s6966_s6, %s6696_s21  ;;  %p6700_p12 = scmp.lt.u32.totalorder %s6696_s21, %s6966_s6 }
 0x574   :  { %p6702_p13 = pnand %p6700_p12, %p6697_p11 }
 0x576   :  { %6705 = shalt.err (!%p6702_p13)
}
 0x577   :  { %5031 = dma.vmem_to_hbm [thread:$0]  %s5029_s24, 128, %s6966_s6, [#allocation5]  }
 0x578   :  { %6714 = dma.done.wait [#allocation5], 128  }
 0x579   :  { %6715 = vsyncadd [#allocation5], 4294967168 }
 0x57a   :  { %5035 = vsyncpa [#allocation4], 1 }
 0x57b   :  { %5036 = vsyncpa [#allocation7], 1 }
 0x57c   :  { %5037 = vsyncpa [#allocation10], 1 }
 0x57d   :  { %5038 = vsyncpa [#allocation13], 1 }
 0x57e   :  { %5039 = vsyncpa [#allocation5], 1 }

</bundles_post_ra>
